<compile_context>
chip_gen: v7x
topology: tpu7x:2x2x1
jax: 0.10.0
libtpu: 0.0.40
codegen_flags: <defaults>
</compile_context>

<pallas_src>
import functools

import numpy as np
import jax
import jax.numpy as jnp
from jax.experimental import pallas as pl
from jax.experimental.pallas import tpu as pltpu

TBW = 128          # frequency-bin lane tile; merged [cos|sin] RHS slab = 2*TBW = 256
TM_MAX = 256       # max frame-tile rows per signal (matmul LHS rows = 2*TM)
EPS = 1e-7         # torch clamp floor on |X|^2

L1_LANES = 512     # lane width of the L1 kernel layout
L1_ROWS = 256      # max row tile of the L1 kernel (512 KiB f32 per input block)


def _round_up(x, m):
    return ((x + m - 1) // m) * m


def _fold8(a):
    """(R, C) -> (8, C) sublane-group partial sums (pure VPU adds; R % 8 == 0)."""
    acc = a[0:8, :]
    for r in range(8, a.shape[0], 8):
        acc = acc + a[r:r + 8, :]
    return acc


# ----------------------------- Pallas kernels ------------------------------ #

def _stft_loss_kernel(fr_ref, basis_ref, out_ref, *, tm, tbw):
    """Grid step (i, j): frame tile i (tm pred rows + tm target rows stacked)
    against frequency-bin tile j of the VMEM-resident [cos|sin] basis."""
    j = pl.program_id(1)     # frequency-bin tile ("arbitrary" accumulation axis)

    @pl.when(j == 0)
    def _():
        out_ref[...] = jnp.zeros_like(out_ref)

    # Single MXU matmul: (2*tm, kpad) x (kpad, 2*tbw) -> (2*tm, 2*tbw) f32
    #   rows    [0:tm)   = pred frames,  [tm:2tm)   = target frames
    #   columns [0:tbw)  = cos (real),   [tbw:2tbw) = sin (imag)
    rhs = basis_ref[j]                                   # resident basis slab
    p = jnp.dot(fr_ref[...], rhs, preferred_element_type=jnp.float32)

    xr = p[:tm, :tbw]
    xi = p[:tm, tbw:]
    yr = p[tm:, :tbw]
    yi = p[tm:, tbw:]

    x_sq = jnp.maximum(xr * xr + xi * xi, EPS)
    y_sq = jnp.maximum(yr * yr + yi * yi, EPS)
    x_mag = jnp.sqrt(x_sq)
    y_mag = jnp.sqrt(y_sq)

    dm = y_mag - x_mag
    d = dm * dm                                          # (|Y|-|X|)^2; 0 in padding
    lg = jnp.abs(jnp.log(y_mag) - jnp.log(x_mag))        # 0 in padding
    # y_sq contributes exactly EPS per padded element; corrected analytically in
    # the wrapper -> no per-step iota/mask needed here.

    out_ref[...] += jnp.concatenate(
        [_fold8(d), _fold8(y_sq), _fold8(lg)], axis=1)   # one wide lane-dense +=


def stft_loss_sums(frames, basis, tm):
    """frames: (n_ftiles*2*tm, kpad) tile-interleaved [pred | target] frames.
    basis:  (n_btiles, kpad, 2*TBW) per-bin-tile [cos | sin] windowed DFT basis.
    Returns (sum((|Y|-|X|)^2), sum(max(|Y|^2, EPS)), sum(|log|Y| - log|X||))."""
    n_rows, kpad = frames.shape
    n_ftiles = n_rows // (2 * tm)
    n_btiles = basis.shape[0]

    kern = functools.partial(_stft_loss_kernel, tm=tm, tbw=TBW)

    itm_f = jnp.dtype(frames.dtype).itemsize
    itm_b = jnp.dtype(basis.dtype).itemsize
    vmem_bytes = (2 * (2 * tm * kpad * itm_f)            # double-buffered frame tile
                  + 2 * int(basis.size) * itm_b          # resident basis (+ slack buf)
                  + (16 << 20))                          # operands/outputs/internal
    vmem_bytes = min(int(vmem_bytes), 60 << 20)          # stay under v7x 64 MiB phys

    out = pl.pallas_call(
        kern,
        out_shape=jax.ShapeDtypeStruct((n_ftiles, 8, 3 * TBW), jnp.float32),
        grid_spec=pltpu.PrefetchScalarGridSpec(
            num_scalar_prefetch=0,
            grid=(n_ftiles, n_btiles),
            in_specs=[
                pl.BlockSpec((2 * tm, kpad), lambda i, j: (i, 0)),
                # full-extent + constant index map -> DMA'd once, VMEM-resident
                pl.BlockSpec((n_btiles, kpad, 2 * TBW), lambda i, j: (0, 0, 0)),
            ],
            out_specs=pl.BlockSpec((None, 8, 3 * TBW), lambda i, j: (i, 0, 0)),
        ),
        compiler_params=pltpu.CompilerParams(
            dimension_semantics=("parallel", "arbitrary"),
            vmem_limit_bytes=vmem_bytes),
    )(frames, basis)

    dsum = jnp.sum(out[:, :, 0 * TBW:1 * TBW])
    ysum = jnp.sum(out[:, :, 1 * TBW:2 * TBW])
    lsum = jnp.sum(out[:, :, 2 * TBW:3 * TBW])
    return dsum, ysum, lsum


def _l1_sum_kernel(p_ref, t_ref, o_ref):
    i = pl.program_id(0)

    @pl.when(i == 0)
    def _():
        o_ref[...] = jnp.zeros_like(o_ref)

    o_ref[...] += _fold8(jnp.abs(p_ref[...] - t_ref[...]))


def l1_sum(predict, target):
    """sum(|p - t|), lane-dense tiling, (8, L1_LANES) VPU partial accumulation."""
    n = predict.size
    rows = pl.cdiv(n, L1_LANES)
    tr = min(L1_ROWS, _round_up(rows, 8))
    rows_pad = _round_up(rows, tr)
    n_pad = rows_pad * L1_LANES
    p = jnp.pad(predict.reshape(-1), (0, n_pad - n)).reshape(rows_pad, L1_LANES)
    t = jnp.pad(target.reshape(-1), (0, n_pad - n)).reshape(rows_pad, L1_LANES)
    out = pl.pallas_call(
        _l1_sum_kernel,
        out_shape=jax.ShapeDtypeStruct((8, L1_LANES), jnp.float32),
        grid_spec=pltpu.PrefetchScalarGridSpec(
            num_scalar_prefetch=0,
            grid=(rows_pad // tr,),
            in_specs=[pl.BlockSpec((tr, L1_LANES), lambda i: (i, 0)),
                      pl.BlockSpec((tr, L1_LANES), lambda i: (i, 0))],
            out_specs=pl.BlockSpec((8, L1_LANES), lambda i: (0, 0)),
        ),
        compiler_params=pltpu.CompilerParams(
            dimension_semantics=("arbitrary",)),
    )(p, t)
    return jnp.sum(out)


# ------------------------------ host/XLA glue ------------------------------- #

@functools.lru_cache(maxsize=None)
def make_merged_basis(n_fft, win_length, kpad, tbw):
    """Windowed DFT basis restricted to the nonzero-window rows (K-trim),
    arranged as (n_btiles, kpad, 2*tbw) with per-tile [cos | sin] columns;
    padded rows / bins are 0."""
    n_bins = n_fft // 2 + 1
    left = (n_fft - win_length) // 2                          # torch.stft centering
    nwin = np.arange(win_length, dtype=np.float64)
    win = 0.5 - 0.5 * np.cos(2.0 * np.pi * nwin / win_length)  # hann, periodic

    nn = (left + np.arange(win_length, dtype=np.int64))[:, None]
    kk = np.arange(n_bins, dtype=np.int64)[None, :]
    ang = 2.0 * np.pi * ((nn * kk) % n_fft).astype(np.float64) / n_fft
    ccos = win[:, None] * np.cos(ang)
    csin = win[:, None] * np.sin(ang)

    n_btiles = -(-n_bins // tbw)
    bpad = n_btiles * tbw
    ccos = np.pad(ccos, ((0, kpad - win_length), (0, bpad - n_bins)))
    csin = np.pad(csin, ((0, kpad - win_length), (0, bpad - n_bins)))
    merged = np.concatenate(
        [ccos.reshape(kpad, n_btiles, tbw), csin.reshape(kpad, n_btiles, tbw)],
        axis=2)                                               # (kpad, n_btiles, 2*tbw)
    return np.ascontiguousarray(merged.transpose(1, 0, 2)).astype(np.float32)


def frame_stacked(predict, target, n_fft, hop, win, kpad, tm):
    """torch.stft(center=True, reflect) framing of both signals, restricted to
    the nonzero-window columns (K-trim), emitted directly (ONE gather) in the
    tile-interleaved layout the kernel consumes:
      rows [i*2tm, i*2tm+tm)     = pred frames of tile i
      rows [i*2tm+tm, (i+1)*2tm) = target frames of tile i; padded rows are 0."""
    B, T = predict.shape
    pad = n_fft // 2
    left = (n_fft - win) // 2
    F = T // hop + 1
    M = B * F
    n_ftiles = pl.cdiv(M, tm)
    n_rows = n_ftiles * 2 * tm

    sig = jnp.concatenate([predict, target], axis=0)                   # (2B, T)
    sigp = jnp.pad(sig, ((0, 0), (pad, pad)), mode="reflect")          # (2B, Tp)
    tp = T + 2 * pad
    flat = jnp.concatenate([sigp.reshape(-1),
                            jnp.zeros((1,), sigp.dtype)])              # zero sink
    zidx = 2 * B * tp

    r = jnp.arange(n_rows, dtype=jnp.int32)
    tile = r // (2 * tm)
    q = r - tile * (2 * tm)
    is_tgt = (q >= tm).astype(jnp.int32)                               # 0=pred, 1=tgt
    m = tile * tm + jnp.where(q >= tm, q - tm, q)                      # frame id
    valid = m < M
    b = m // F
    f = m - b * F
    base = (is_tgt * B + b) * tp + f * hop + left
    cols = jnp.arange(win, dtype=jnp.int32)
    idx = jnp.where(valid[:, None], base[:, None] + cols[None, :], zidx)
    frames = flat[idx]                                                 # (n_rows, win)
    if kpad > win:
        frames = jnp.pad(frames, ((0, 0), (0, kpad - win)))
    return frames, M, F


def l1_mrstft_loss(predict, target, factor_sc=0.1, factor_mag=0.1,
                   fft_sizes=(1024, 2048, 512),
                   hop_sizes=(120, 240, 50),
                   win_lengths=(600, 1200, 240),
                   mxu_dtype=jnp.bfloat16):
    """L1(pred, tgt) + factor_sc*mean(SC) + factor_mag*mean(log-mag L1).
    mxu_dtype=jnp.bfloat16 runs the DFT matmul at bf16 with f32 accumulation;
    pass jnp.float32 for closer bit-level parity with torch.stft."""
    predict = predict.astype(jnp.float32)
    target = target.astype(jnp.float32)
    B, T = predict.shape

    # plain L1 loss (mean |p - t|)
    loss = l1_sum(predict, target) / (B * T)

    sc_total = jnp.float32(0.0)
    mag_total = jnp.float32(0.0)
    for n_fft, hop, win in zip(fft_sizes, hop_sizes, win_lengths):
        n_bins = n_fft // 2 + 1
        n_btiles = pl.cdiv(n_bins, TBW)
        kpad = _round_up(win, 128)                         # K-trim to nonzero window
        F = T // hop + 1
        M = B * F
        # cap tm at ~M/2 so the "parallel" frame axis has >= 2 tiles (v7x dual TC)
        tm = min(TM_MAX, _round_up(pl.cdiv(M, 2), 8))

        basis = jnp.asarray(make_merged_basis(n_fft, win, kpad, TBW),
                            dtype=mxu_dtype)               # jit constant
        frames, M, F = frame_stacked(predict, target, n_fft, hop, win, kpad, tm)
        frames = frames.astype(mxu_dtype)

        dsum, ysum, lsum = stft_loss_sums(frames, basis, tm)

        # analytic padding correction: each padded element adds exactly EPS to
        # ysum and exactly 0 to dsum / lsum (2-sqrt form); count is static.
        n_ftiles = frames.shape[0] // (2 * tm)
        n_padded = n_ftiles * tm * n_btiles * TBW - M * n_bins
        ysum = ysum - jnp.float32(n_padded * float(np.float32(EPS)))

        sc_total = sc_total + jnp.sqrt(dsum) / jnp.sqrt(ysum)   # fro-norm ratio
        mag_total = mag_total + lsum / (M * n_bins)             # mean log-mag L1

    n_res = len(fft_sizes)
    loss = loss + factor_sc * (sc_total / n_res) + factor_mag * (mag_total / n_res)
    return loss


# ------------------------------- main --------------------------------------- #

if __name__ == "__main__":
    key = jax.random.PRNGKey(0)
    k1, k2 = jax.random.split(key)
    B, T = 2, 2048                     # small audio batch; T >= n_fft for reflect pad
    predict = jax.random.normal(k1, (B, T), dtype=jnp.float32)
    target = jax.random.normal(k2, (B, T), dtype=jnp.float32)

    loss_fn = jax.jit(functools.partial(l1_mrstft_loss, factor_sc=0.1, factor_mag=0.1))
    loss = loss_fn(predict, target)
    jax.block_until_ready(loss)
    assert loss.shape == () and bool(jnp.isfinite(loss))
    print("KERNEL_OK")
</pallas_src>

<mosaic_0001>
module attributes {stable_mosaic.version = 11 : i64} {
  func.func @_stft_loss_kernel(%arg0: i32, %arg1: i32, %arg2: memref<32x1280xbf16, #tpu.memory_space<vmem>>, %arg3: memref<9x1280x256xbf16, #tpu.memory_space<vmem>>, %arg4: memref<1x8x384xf32, #tpu.memory_space<vmem>>) attributes {dimension_semantics = [#tpu.dimension_semantics<parallel>, #tpu.dimension_semantics<arbitrary>], iteration_bounds = array<i64: 2, 9>, scalar_prefetch = 0 : i64, scratch_operands = 0 : i64, tpu.core_type = #tpu.core_type<tc>, window_params = [{transform_indices = @transform_0, window_bounds = array<i64: 32, 1280>}, {pipeline_mode = #tpu.pipeline_mode<synchronous>, transform_indices = @transform_1, window_bounds = array<i64: 9, 1280, 256>}, {transform_indices = @transform_2, window_bounds = array<i64: 1, 8, 384>}]} {
    %c0_i32 = arith.constant 0 : i32
    %0 = arith.cmpi eq, %arg1, %c0_i32 : i32
    %1 = arith.extui %0 : i1 to i32
    %c0_i32_0 = arith.constant 0 : i32
    %2 = arith.cmpi ne, %1, %c0_i32_0 : i32
    scf.if %2 {
      %cst_12 = arith.constant 0.000000e+00 : f32
      %46 = vector.broadcast %cst_12 : f32 to vector<8x384xf32>
      %c0_13 = arith.constant 0 : index
      %c0_14 = arith.constant 0 : index
      %c0_15 = arith.constant 0 : index
      %47 = vector.load %arg4[%c0_13, %c0_14, %c0_15] : memref<1x8x384xf32, #tpu.memory_space<vmem>>, vector<1x8x384xf32>
      %48 = vector.shape_cast %47 : vector<1x8x384xf32> to vector<8x384xf32>
      %49 = vector.shape_cast %46 : vector<8x384xf32> to vector<1x8x384xf32>
      tpu.vector_store %arg4[%c0_13, %c0_14, %c0_15], %49 {strides = array<i32>} : memref<1x8x384xf32, #tpu.memory_space<vmem>>, vector<1x8x384xf32>,
    } else {
    }
    %3 = arith.index_cast %arg1 : i32 to index
    %c0 = arith.constant 0 : index
    %c0_1 = arith.constant 0 : index
    %4 = vector.load %arg3[%3, %c0, %c0_1] : memref<9x1280x256xbf16, #tpu.memory_space<vmem>>, vector<1x1280x256xbf16>
    %5 = vector.shape_cast %4 : vector<1x1280x256xbf16> to vector<1280x256xbf16>
    %c0_2 = arith.constant 0 : index
    %c0_3 = arith.constant 0 : index
    %6 = vector.load %arg2[%c0_2, %c0_3] : memref<32x1280xbf16, #tpu.memory_space<vmem>>, vector<32x1280xbf16>
    %cst = arith.constant dense<0.000000e+00> : vector<32x256xf32>
    %7 = tpu.matmul %6, %5, %cst {dimension_numbers = #tpu.dot_dimension_numbers<[1], [0], [0], [1], [0, 0, 1, 1], [], []>} : vector<32x1280xbf16>, vector<1280x256xbf16>, vector<32x256xf32> -> vector<32x256xf32>
    %8 = vector.extract_strided_slice %7 {offsets = [0, 0], sizes = [16, 128], strides = [1, 1]} : vector<32x256xf32> to vector<16x128xf32>
    %9 = vector.extract_strided_slice %7 {offsets = [0, 128], sizes = [16, 128], strides = [1, 1]} : vector<32x256xf32> to vector<16x128xf32>
    %10 = vector.extract_strided_slice %7 {offsets = [16, 0], sizes = [16, 128], strides = [1, 1]} : vector<32x256xf32> to vector<16x128xf32>
    %11 = vector.extract_strided_slice %7 {offsets = [16, 128], sizes = [16, 128], strides = [1, 1]} : vector<32x256xf32> to vector<16x128xf32>
    %12 = arith.mulf %8, %8 : vector<16x128xf32>
    %13 = arith.mulf %9, %9 : vector<16x128xf32>
    %14 = arith.addf %12, %13 : vector<16x128xf32>
    %cst_4 = arith.constant 1.000000e-07 : f32
    %15 = vector.broadcast %cst_4 : f32 to vector<16x128xf32>
    %16 = arith.maximumf %14, %15 : vector<16x128xf32>
    %17 = arith.mulf %10, %10 : vector<16x128xf32>
    %18 = arith.mulf %11, %11 : vector<16x128xf32>
    %19 = arith.addf %17, %18 : vector<16x128xf32>
    %cst_5 = arith.constant 1.000000e-07 : f32
    %20 = vector.broadcast %cst_5 : f32 to vector<16x128xf32>
    %21 = arith.maximumf %19, %20 : vector<16x128xf32>
    %22 = math.sqrt %16 : vector<16x128xf32>
    %23 = math.sqrt %21 : vector<16x128xf32>
    %24 = arith.subf %23, %22 : vector<16x128xf32>
    %25 = arith.mulf %24, %24 : vector<16x128xf32>
    %26 = math.log %23 : vector<16x128xf32>
    %27 = math.log %22 : vector<16x128xf32>
    %28 = arith.subf %26, %27 : vector<16x128xf32>
    %29 = math.absf %28 : vector<16x128xf32>
    %c0_6 = arith.constant 0 : index
    %c0_7 = arith.constant 0 : index
    %c0_8 = arith.constant 0 : index
    %30 = vector.load %arg4[%c0_6, %c0_7, %c0_8] : memref<1x8x384xf32, #tpu.memory_space<vmem>>, vector<1x8x384xf32>
    %31 = vector.shape_cast %30 : vector<1x8x384xf32> to vector<8x384xf32>
    %32 = vector.extract_strided_slice %25 {offsets = [0, 0], sizes = [8, 128], strides = [1, 1]} : vector<16x128xf32> to vector<8x128xf32>
    %33 = vector.extract_strided_slice %25 {offsets = [8, 0], sizes = [8, 128], strides = [1, 1]} : vector<16x128xf32> to vector<8x128xf32>
    %34 = arith.addf %32, %33 : vector<8x128xf32>
    %35 = vector.extract_strided_slice %21 {offsets = [0, 0], sizes = [8, 128], strides = [1, 1]} : vector<16x128xf32> to vector<8x128xf32>
    %36 = vector.extract_strided_slice %21 {offsets = [8, 0], sizes = [8, 128], strides = [1, 1]} : vector<16x128xf32> to vector<8x128xf32>
    %37 = arith.addf %35, %36 : vector<8x128xf32>
    %38 = vector.extract_strided_slice %29 {offsets = [0, 0], sizes = [8, 128], strides = [1, 1]} : vector<16x128xf32> to vector<8x128xf32>
    %39 = vector.extract_strided_slice %29 {offsets = [8, 0], sizes = [8, 128], strides = [1, 1]} : vector<16x128xf32> to vector<8x128xf32>
    %40 = arith.addf %38, %39 : vector<8x128xf32>
    %41 = tpu.concatenate %34, %37, %40 in 1 : vector<8x128xf32>, vector<8x128xf32>, vector<8x128xf32> -> vector<8x384xf32>
    %42 = arith.addf %31, %41 : vector<8x384xf32>
    %c0_9 = arith.constant 0 : index
    %c0_10 = arith.constant 0 : index
    %c0_11 = arith.constant 0 : index
    %43 = vector.load %arg4[%c0_9, %c0_10, %c0_11] : memref<1x8x384xf32, #tpu.memory_space<vmem>>, vector<1x8x384xf32>
    %44 = vector.shape_cast %43 : vector<1x8x384xf32> to vector<8x384xf32>
    %45 = vector.shape_cast %42 : vector<8x384xf32> to vector<1x8x384xf32>
    tpu.vector_store %arg4[%c0_9, %c0_10, %c0_11], %45 {strides = array<i32>} : memref<1x8x384xf32, #tpu.memory_space<vmem>>, vector<1x8x384xf32>,
    return
  }
  func.func @transform_0(%arg0: i32, %arg1: i32) -> (i32, i32) {
    %c0_i32 = arith.constant 0 : i32
    %c0_i32_0 = arith.constant 0 : i32
    return %arg0, %c0_i32 : i32, i32
  }
  func.func @transform_1(%arg0: i32, %arg1: i32) -> (i32, i32, i32) {
    %c0_i32 = arith.constant 0 : i32
    %c0_i32_0 = arith.constant 0 : i32
    %c0_i32_1 = arith.constant 0 : i32
    %c0_i32_2 = arith.constant 0 : i32
    return %c0_i32, %c0_i32_0, %c0_i32_1 : i32, i32, i32
  }
  func.func @transform_2(%arg0: i32, %arg1: i32) -> (i32, i32, i32) {
    %c0_i32 = arith.constant 0 : i32
    %c0_i32_0 = arith.constant 0 : i32
    %c0_i32_1 = arith.constant 0 : i32
    return %arg0, %c0_i32, %c0_i32_0 : i32, i32, i32
  }
}

module attributes {stable_mosaic.version = 11 : i64} {
  func.func @_stft_loss_kernel(%arg0: i32, %arg1: i32, %arg2: memref<48x640xbf16, #tpu.memory_space<vmem>>, %arg3: memref<5x640x256xbf16, #tpu.memory_space<vmem>>, %arg4: memref<1x8x384xf32, #tpu.memory_space<vmem>>) attributes {dimension_semantics = [#tpu.dimension_semantics<parallel>, #tpu.dimension_semantics<arbitrary>], iteration_bounds = array<i64: 2, 5>, scalar_prefetch = 0 : i64, scratch_operands = 0 : i64, tpu.core_type = #tpu.core_type<tc>, window_params = [{transform_indices = @transform_0, window_bounds = array<i64: 48, 640>}, {pipeline_mode = #tpu.pipeline_mode<synchronous>, transform_indices = @transform_1, window_bounds = array<i64: 5, 640, 256>}, {transform_indices = @transform_2, window_bounds = array<i64: 1, 8, 384>}]} {
    %c0_i32 = arith.constant 0 : i32
    %0 = arith.cmpi eq, %arg1, %c0_i32 : i32
    %1 = arith.extui %0 : i1 to i32
    %c0_i32_0 = arith.constant 0 : i32
    %2 = arith.cmpi ne, %1, %c0_i32_0 : i32
    scf.if %2 {
      %cst_12 = arith.constant 0.000000e+00 : f32
      %52 = vector.broadcast %cst_12 : f32 to vector<8x384xf32>
      %c0_13 = arith.constant 0 : index
      %c0_14 = arith.constant 0 : index
      %c0_15 = arith.constant 0 : index
      %53 = vector.load %arg4[%c0_13, %c0_14, %c0_15] : memref<1x8x384xf32, #tpu.memory_space<vmem>>, vector<1x8x384xf32>
      %54 = vector.shape_cast %53 : vector<1x8x384xf32> to vector<8x384xf32>
      %55 = vector.shape_cast %52 : vector<8x384xf32> to vector<1x8x384xf32>
      tpu.vector_store %arg4[%c0_13, %c0_14, %c0_15], %55 {strides = array<i32>} : memref<1x8x384xf32, #tpu.memory_space<vmem>>, vector<1x8x384xf32>,
    } else {
    }
    %3 = arith.index_cast %arg1 : i32 to index
    %c0 = arith.constant 0 : index
    %c0_1 = arith.constant 0 : index
    %4 = vector.load %arg3[%3, %c0, %c0_1] : memref<5x640x256xbf16, #tpu.memory_space<vmem>>, vector<1x640x256xbf16>
    %5 = vector.shape_cast %4 : vector<1x640x256xbf16> to vector<640x256xbf16>
    %c0_2 = arith.constant 0 : index
    %c0_3 = arith.constant 0 : index
    %6 = vector.load %arg2[%c0_2, %c0_3] : memref<48x640xbf16, #tpu.memory_space<vmem>>, vector<48x640xbf16>
    %cst = arith.constant dense<0.000000e+00> : vector<48x256xf32>
    %7 = tpu.matmul %6, %5, %cst {dimension_numbers = #tpu.dot_dimension_numbers<[1], [0], [0], [1], [0, 0, 1, 1], [], []>} : vector<48x640xbf16>, vector<640x256xbf16>, vector<48x256xf32> -> vector<48x256xf32>
    %8 = vector.extract_strided_slice %7 {offsets = [0, 0], sizes = [24, 128], strides = [1, 1]} : vector<48x256xf32> to vector<24x128xf32>
    %9 = vector.extract_strided_slice %7 {offsets = [0, 128], sizes = [24, 128], strides = [1, 1]} : vector<48x256xf32> to vector<24x128xf32>
    %10 = vector.extract_strided_slice %7 {offsets = [24, 0], sizes = [24, 128], strides = [1, 1]} : vector<48x256xf32> to vector<24x128xf32>
    %11 = vector.extract_strided_slice %7 {offsets = [24, 128], sizes = [24, 128], strides = [1, 1]} : vector<48x256xf32> to vector<24x128xf32>
    %12 = arith.mulf %8, %8 : vector<24x128xf32>
    %13 = arith.mulf %9, %9 : vector<24x128xf32>
    %14 = arith.addf %12, %13 : vector<24x128xf32>
    %cst_4 = arith.constant 1.000000e-07 : f32
    %15 = vector.broadcast %cst_4 : f32 to vector<24x128xf32>
    %16 = arith.maximumf %14, %15 : vector<24x128xf32>
    %17 = arith.mulf %10, %10 : vector<24x128xf32>
    %18 = arith.mulf %11, %11 : vector<24x128xf32>
    %19 = arith.addf %17, %18 : vector<24x128xf32>
    %cst_5 = arith.constant 1.000000e-07 : f32
    %20 = vector.broadcast %cst_5 : f32 to vector<24x128xf32>
    %21 = arith.maximumf %19, %20 : vector<24x128xf32>
    %22 = math.sqrt %16 : vector<24x128xf32>
    %23 = math.sqrt %21 : vector<24x128xf32>
    %24 = arith.subf %23, %22 : vector<24x128xf32>
    %25 = arith.mulf %24, %24 : vector<24x128xf32>
    %26 = math.log %23 : vector<24x128xf32>
    %27 = math.log %22 : vector<24x128xf32>
    %28 = arith.subf %26, %27 : vector<24x128xf32>
    %29 = math.absf %28 : vector<24x128xf32>
    %c0_6 = arith.constant 0 : index
    %c0_7 = arith.constant 0 : index
    %c0_8 = arith.constant 0 : index
    %30 = vector.load %arg4[%c0_6, %c0_7, %c0_8] : memref<1x8x384xf32, #tpu.memory_space<vmem>>, vector<1x8x384xf32>
    %31 = vector.shape_cast %30 : vector<1x8x384xf32> to vector<8x384xf32>
    %32 = vector.extract_strided_slice %25 {offsets = [0, 0], sizes = [8, 128], strides = [1, 1]} : vector<24x128xf32> to vector<8x128xf32>
    %33 = vector.extract_strided_slice %25 {offsets = [8, 0], sizes = [8, 128], strides = [1, 1]} : vector<24x128xf32> to vector<8x128xf32>
    %34 = arith.addf %32, %33 : vector<8x128xf32>
    %35 = vector.extract_strided_slice %25 {offsets = [16, 0], sizes = [8, 128], strides = [1, 1]} : vector<24x128xf32> to vector<8x128xf32>
    %36 = arith.addf %34, %35 : vector<8x128xf32>
    %37 = vector.extract_strided_slice %21 {offsets = [0, 0], sizes = [8, 128], strides = [1, 1]} : vector<24x128xf32> to vector<8x128xf32>
    %38 = vector.extract_strided_slice %21 {offsets = [8, 0], sizes = [8, 128], strides = [1, 1]} : vector<24x128xf32> to vector<8x128xf32>
    %39 = arith.addf %37, %38 : vector<8x128xf32>
    %40 = vector.extract_strided_slice %21 {offsets = [16, 0], sizes = [8, 128], strides = [1, 1]} : vector<24x128xf32> to vector<8x128xf32>
    %41 = arith.addf %39, %40 : vector<8x128xf32>
    %42 = vector.extract_strided_slice %29 {offsets = [0, 0], sizes = [8, 128], strides = [1, 1]} : vector<24x128xf32> to vector<8x128xf32>
    %43 = vector.extract_strided_slice %29 {offsets = [8, 0], sizes = [8, 128], strides = [1, 1]} : vector<24x128xf32> to vector<8x128xf32>
    %44 = arith.addf %42, %43 : vector<8x128xf32>
    %45 = vector.extract_strided_slice %29 {offsets = [16, 0], sizes = [8, 128], strides = [1, 1]} : vector<24x128xf32> to vector<8x128xf32>
    %46 = arith.addf %44, %45 : vector<8x128xf32>
    %47 = tpu.concatenate %36, %41, %46 in 1 : vector<8x128xf32>, vector<8x128xf32>, vector<8x128xf32> -> vector<8x384xf32>
    %48 = arith.addf %31, %47 : vector<8x384xf32>
    %c0_9 = arith.constant 0 : index
    %c0_10 = arith.constant 0 : index
    %c0_11 = arith.constant 0 : index
    %49 = vector.load %arg4[%c0_9, %c0_10, %c0_11] : memref<1x8x384xf32, #tpu.memory_space<vmem>>, vector<1x8x384xf32>
    %50 = vector.shape_cast %49 : vector<1x8x384xf32> to vector<8x384xf32>
    %51 = vector.shape_cast %48 : vector<8x384xf32> to vector<1x8x384xf32>
    tpu.vector_store %arg4[%c0_9, %c0_10, %c0_11], %51 {strides = array<i32>} : memref<1x8x384xf32, #tpu.memory_space<vmem>>, vector<1x8x384xf32>,
    return
  }
  func.func @transform_0(%arg0: i32, %arg1: i32) -> (i32, i32) {
    %c0_i32 = arith.constant 0 : i32
    %c0_i32_0 = arith.constant 0 : i32
    return %arg0, %c0_i32 : i32, i32
  }
  func.func @transform_1(%arg0: i32, %arg1: i32) -> (i32, i32, i32) {
    %c0_i32 = arith.constant 0 : i32
    %c0_i32_0 = arith.constant 0 : i32
    %c0_i32_1 = arith.constant 0 : i32
    %c0_i32_2 = arith.constant 0 : i32
    return %c0_i32, %c0_i32_0, %c0_i32_1 : i32, i32, i32
  }
  func.func @transform_2(%arg0: i32, %arg1: i32) -> (i32, i32, i32) {
    %c0_i32 = arith.constant 0 : i32
    %c0_i32_0 = arith.constant 0 : i32
    %c0_i32_1 = arith.constant 0 : i32
    return %arg0, %c0_i32, %c0_i32_0 : i32, i32, i32
  }
}

module attributes {stable_mosaic.version = 11 : i64} {
  func.func @_stft_loss_kernel(%arg0: i32, %arg1: i32, %arg2: memref<96x256xbf16, #tpu.memory_space<vmem>>, %arg3: memref<3x256x256xbf16, #tpu.memory_space<vmem>>, %arg4: memref<1x8x384xf32, #tpu.memory_space<vmem>>) attributes {dimension_semantics = [#tpu.dimension_semantics<parallel>, #tpu.dimension_semantics<arbitrary>], iteration_bounds = array<i64: 2, 3>, scalar_prefetch = 0 : i64, scratch_operands = 0 : i64, tpu.core_type = #tpu.core_type<tc>, window_params = [{transform_indices = @transform_0, window_bounds = array<i64: 96, 256>}, {pipeline_mode = #tpu.pipeline_mode<synchronous>, transform_indices = @transform_1, window_bounds = array<i64: 3, 256, 256>}, {transform_indices = @transform_2, window_bounds = array<i64: 1, 8, 384>}]} {
    %c0_i32 = arith.constant 0 : i32
    %0 = arith.cmpi eq, %arg1, %c0_i32 : i32
    %1 = arith.extui %0 : i1 to i32
    %c0_i32_0 = arith.constant 0 : i32
    %2 = arith.cmpi ne, %1, %c0_i32_0 : i32
    scf.if %2 {
      %cst_12 = arith.constant 0.000000e+00 : f32
      %70 = vector.broadcast %cst_12 : f32 to vector<8x384xf32>
      %c0_13 = arith.constant 0 : index
      %c0_14 = arith.constant 0 : index
      %c0_15 = arith.constant 0 : index
      %71 = vector.load %arg4[%c0_13, %c0_14, %c0_15] : memref<1x8x384xf32, #tpu.memory_space<vmem>>, vector<1x8x384xf32>
      %72 = vector.shape_cast %71 : vector<1x8x384xf32> to vector<8x384xf32>
      %73 = vector.shape_cast %70 : vector<8x384xf32> to vector<1x8x384xf32>
      tpu.vector_store %arg4[%c0_13, %c0_14, %c0_15], %73 {strides = array<i32>} : memref<1x8x384xf32, #tpu.memory_space<vmem>>, vector<1x8x384xf32>,
    } else {
    }
    %3 = arith.index_cast %arg1 : i32 to index
    %c0 = arith.constant 0 : index
    %c0_1 = arith.constant 0 : index
    %4 = vector.load %arg3[%3, %c0, %c0_1] : memref<3x256x256xbf16, #tpu.memory_space<vmem>>, vector<1x256x256xbf16>
    %5 = vector.shape_cast %4 : vector<1x256x256xbf16> to vector<256x256xbf16>
    %c0_2 = arith.constant 0 : index
    %c0_3 = arith.constant 0 : index
    %6 = vector.load %arg2[%c0_2, %c0_3] : memref<96x256xbf16, #tpu.memory_space<vmem>>, vector<96x256xbf16>
    %cst = arith.constant dense<0.000000e+00> : vector<96x256xf32>
    %7 = tpu.matmul %6, %5, %cst {dimension_numbers = #tpu.dot_dimension_numbers<[1], [0], [0], [1], [0, 0, 1, 1], [], []>} : vector<96x256xbf16>, vector<256x256xbf16>, vector<96x256xf32> -> vector<96x256xf32>
    %8 = vector.extract_strided_slice %7 {offsets = [0, 0], sizes = [48, 128], strides = [1, 1]} : vector<96x256xf32> to vector<48x128xf32>
    %9 = vector.extract_strided_slice %7 {offsets = [0, 128], sizes = [48, 128], strides = [1, 1]} : vector<96x256xf32> to vector<48x128xf32>
    %10 = vector.extract_strided_slice %7 {offsets = [48, 0], sizes = [48, 128], strides = [1, 1]} : vector<96x256xf32> to vector<48x128xf32>
    %11 = vector.extract_strided_slice %7 {offsets = [48, 128], sizes = [48, 128], strides = [1, 1]} : vector<96x256xf32> to vector<48x128xf32>
    %12 = arith.mulf %8, %8 : vector<48x128xf32>
    %13 = arith.mulf %9, %9 : vector<48x128xf32>
    %14 = arith.addf %12, %13 : vector<48x128xf32>
    %cst_4 = arith.constant 1.000000e-07 : f32
    %15 = vector.broadcast %cst_4 : f32 to vector<48x128xf32>
    %16 = arith.maximumf %14, %15 : vector<48x128xf32>
    %17 = arith.mulf %10, %10 : vector<48x128xf32>
    %18 = arith.mulf %11, %11 : vector<48x128xf32>
    %19 = arith.addf %17, %18 : vector<48x128xf32>
    %cst_5 = arith.constant 1.000000e-07 : f32
    %20 = vector.broadcast %cst_5 : f32 to vector<48x128xf32>
    %21 = arith.maximumf %19, %20 : vector<48x128xf32>
    %22 = math.sqrt %16 : vector<48x128xf32>
    %23 = math.sqrt %21 : vector<48x128xf32>
    %24 = arith.subf %23, %22 : vector<48x128xf32>
    %25 = arith.mulf %24, %24 : vector<48x128xf32>
    %26 = math.log %23 : vector<48x128xf32>
    %27 = math.log %22 : vector<48x128xf32>
    %28 = arith.subf %26, %27 : vector<48x128xf32>
    %29 = math.absf %28 : vector<48x128xf32>
    %c0_6 = arith.constant 0 : index
    %c0_7 = arith.constant 0 : index
    %c0_8 = arith.constant 0 : index
    %30 = vector.load %arg4[%c0_6, %c0_7, %c0_8] : memref<1x8x384xf32, #tpu.memory_space<vmem>>, vector<1x8x384xf32>
    %31 = vector.shape_cast %30 : vector<1x8x384xf32> to vector<8x384xf32>
    %32 = vector.extract_strided_slice %25 {offsets = [0, 0], sizes = [8, 128], strides = [1, 1]} : vector<48x128xf32> to vector<8x128xf32>
    %33 = vector.extract_strided_slice %25 {offsets = [8, 0], sizes = [8, 128], strides = [1, 1]} : vector<48x128xf32> to vector<8x128xf32>
    %34 = arith.addf %32, %33 : vector<8x128xf32>
    %35 = vector.extract_strided_slice %25 {offsets = [16, 0], sizes = [8, 128], strides = [1, 1]} : vector<48x128xf32> to vector<8x128xf32>
    %36 = arith.addf %34, %35 : vector<8x128xf32>
    %37 = vector.extract_strided_slice %25 {offsets = [24, 0], sizes = [8, 128], strides = [1, 1]} : vector<48x128xf32> to vector<8x128xf32>
    %38 = arith.addf %36, %37 : vector<8x128xf32>
    %39 = vector.extract_strided_slice %25 {offsets = [32, 0], sizes = [8, 128], strides = [1, 1]} : vector<48x128xf32> to vector<8x128xf32>
    %40 = arith.addf %38, %39 : vector<8x128xf32>
    %41 = vector.extract_strided_slice %25 {offsets = [40, 0], sizes = [8, 128], strides = [1, 1]} : vector<48x128xf32> to vector<8x128xf32>
    %42 = arith.addf %40, %41 : vector<8x128xf32>
    %43 = vector.extract_strided_slice %21 {offsets = [0, 0], sizes = [8, 128], strides = [1, 1]} : vector<48x128xf32> to vector<8x128xf32>
    %44 = vector.extract_strided_slice %21 {offsets = [8, 0], sizes = [8, 128], strides = [1, 1]} : vector<48x128xf32> to vector<8x128xf32>
    %45 = arith.addf %43, %44 : vector<8x128xf32>
    %46 = vector.extract_strided_slice %21 {offsets = [16, 0], sizes = [8, 128], strides = [1, 1]} : vector<48x128xf32> to vector<8x128xf32>
    %47 = arith.addf %45, %46 : vector<8x128xf32>
    %48 = vector.extract_strided_slice %21 {offsets = [24, 0], sizes = [8, 128], strides = [1, 1]} : vector<48x128xf32> to vector<8x128xf32>
    %49 = arith.addf %47, %48 : vector<8x128xf32>
    %50 = vector.extract_strided_slice %21 {offsets = [32, 0], sizes = [8, 128], strides = [1, 1]} : vector<48x128xf32> to vector<8x128xf32>
    %51 = arith.addf %49, %50 : vector<8x128xf32>
    %52 = vector.extract_strided_slice %21 {offsets = [40, 0], sizes = [8, 128], strides = [1, 1]} : vector<48x128xf32> to vector<8x128xf32>
    %53 = arith.addf %51, %52 : vector<8x128xf32>
    %54 = vector.extract_strided_slice %29 {offsets = [0, 0], sizes = [8, 128], strides = [1, 1]} : vector<48x128xf32> to vector<8x128xf32>
    %55 = vector.extract_strided_slice %29 {offsets = [8, 0], sizes = [8, 128], strides = [1, 1]} : vector<48x128xf32> to vector<8x128xf32>
    %56 = arith.addf %54, %55 : vector<8x128xf32>
    %57 = vector.extract_strided_slice %29 {offsets = [16, 0], sizes = [8, 128], strides = [1, 1]} : vector<48x128xf32> to vector<8x128xf32>
    %58 = arith.addf %56, %57 : vector<8x128xf32>
    %59 = vector.extract_strided_slice %29 {offsets = [24, 0], sizes = [8, 128], strides = [1, 1]} : vector<48x128xf32> to vector<8x128xf32>
    %60 = arith.addf %58, %59 : vector<8x128xf32>
    %61 = vector.extract_strided_slice %29 {offsets = [32, 0], sizes = [8, 128], strides = [1, 1]} : vector<48x128xf32> to vector<8x128xf32>
    %62 = arith.addf %60, %61 : vector<8x128xf32>
    %63 = vector.extract_strided_slice %29 {offsets = [40, 0], sizes = [8, 128], strides = [1, 1]} : vector<48x128xf32> to vector<8x128xf32>
    %64 = arith.addf %62, %63 : vector<8x128xf32>
    %65 = tpu.concatenate %42, %53, %64 in 1 : vector<8x128xf32>, vector<8x128xf32>, vector<8x128xf32> -> vector<8x384xf32>
    %66 = arith.addf %31, %65 : vector<8x384xf32>
    %c0_9 = arith.constant 0 : index
    %c0_10 = arith.constant 0 : index
    %c0_11 = arith.constant 0 : index
    %67 = vector.load %arg4[%c0_9, %c0_10, %c0_11] : memref<1x8x384xf32, #tpu.memory_space<vmem>>, vector<1x8x384xf32>
    %68 = vector.shape_cast %67 : vector<1x8x384xf32> to vector<8x384xf32>
    %69 = vector.shape_cast %66 : vector<8x384xf32> to vector<1x8x384xf32>
    tpu.vector_store %arg4[%c0_9, %c0_10, %c0_11], %69 {strides = array<i32>} : memref<1x8x384xf32, #tpu.memory_space<vmem>>, vector<1x8x384xf32>,
    return
  }
  func.func @transform_0(%arg0: i32, %arg1: i32) -> (i32, i32) {
    %c0_i32 = arith.constant 0 : i32
    %c0_i32_0 = arith.constant 0 : i32
    return %arg0, %c0_i32 : i32, i32
  }
  func.func @transform_1(%arg0: i32, %arg1: i32) -> (i32, i32, i32) {
    %c0_i32 = arith.constant 0 : i32
    %c0_i32_0 = arith.constant 0 : i32
    %c0_i32_1 = arith.constant 0 : i32
    %c0_i32_2 = arith.constant 0 : i32
    return %c0_i32, %c0_i32_0, %c0_i32_1 : i32, i32, i32
  }
  func.func @transform_2(%arg0: i32, %arg1: i32) -> (i32, i32, i32) {
    %c0_i32 = arith.constant 0 : i32
    %c0_i32_0 = arith.constant 0 : i32
    %c0_i32_1 = arith.constant 0 : i32
    return %arg0, %c0_i32, %c0_i32_0 : i32, i32, i32
  }
}

module attributes {stable_mosaic.version = 11 : i64} {
  func.func @_l1_sum_kernel(%arg0: i32, %arg1: memref<8x512xf32, #tpu.memory_space<vmem>>, %arg2: memref<8x512xf32, #tpu.memory_space<vmem>>, %arg3: memref<8x512xf32, #tpu.memory_space<vmem>>) attributes {dimension_semantics = [#tpu.dimension_semantics<arbitrary>], iteration_bounds = array<i64: 1>, scalar_prefetch = 0 : i64, scratch_operands = 0 : i64, tpu.core_type = #tpu.core_type<tc>, window_params = [{transform_indices = @transform_0, window_bounds = array<i64: 8, 512>}, {transform_indices = @transform_1, window_bounds = array<i64: 8, 512>}, {pipeline_mode = #tpu.pipeline_mode<synchronous>, transform_indices = @transform_2, window_bounds = array<i64: 8, 512>}]} {
    %c0_i32 = arith.constant 0 : i32
    %0 = arith.cmpi eq, %arg0, %c0_i32 : i32
    %1 = arith.extui %0 : i1 to i32
    %c0_i32_0 = arith.constant 0 : i32
    %2 = arith.cmpi ne, %1, %c0_i32_0 : i32
    scf.if %2 {
      %cst = arith.constant 0.000000e+00 : f32
      %10 = vector.broadcast %cst : f32 to vector<8x512xf32>
      %c0_8 = arith.constant 0 : index
      %c0_9 = arith.constant 0 : index
      %11 = vector.load %arg3[%c0_8, %c0_9] : memref<8x512xf32, #tpu.memory_space<vmem>>, vector<8x512xf32>
      tpu.vector_store %arg3[%c0_8, %c0_9], %10 {strides = array<i32>} : memref<8x512xf32, #tpu.memory_space<vmem>>, vector<8x512xf32>,
    } else {
    }
    %c0 = arith.constant 0 : index
    %c0_1 = arith.constant 0 : index
    %3 = vector.load %arg3[%c0, %c0_1] : memref<8x512xf32, #tpu.memory_space<vmem>>, vector<8x512xf32>
    %c0_2 = arith.constant 0 : index
    %c0_3 = arith.constant 0 : index
    %4 = vector.load %arg1[%c0_2, %c0_3] : memref<8x512xf32, #tpu.memory_space<vmem>>, vector<8x512xf32>
    %c0_4 = arith.constant 0 : index
    %c0_5 = arith.constant 0 : index
    %5 = vector.load %arg2[%c0_4, %c0_5] : memref<8x512xf32, #tpu.memory_space<vmem>>, vector<8x512xf32>
    %6 = arith.subf %4, %5 : vector<8x512xf32>
    %7 = math.absf %6 : vector<8x512xf32>
    %8 = arith.addf %3, %7 : vector<8x512xf32>
    %c0_6 = arith.constant 0 : index
    %c0_7 = arith.constant 0 : index
    %9 = vector.load %arg3[%c0_6, %c0_7] : memref<8x512xf32, #tpu.memory_space<vmem>>, vector<8x512xf32>
    tpu.vector_store %arg3[%c0_6, %c0_7], %8 {strides = array<i32>} : memref<8x512xf32, #tpu.memory_space<vmem>>, vector<8x512xf32>,
    return
  }
  func.func @transform_0(%arg0: i32) -> (i32, i32) {
    %c0_i32 = arith.constant 0 : i32
    %c0_i32_0 = arith.constant 0 : i32
    return %arg0, %c0_i32 : i32, i32
  }
  func.func @transform_1(%arg0: i32) -> (i32, i32) {
    %c0_i32 = arith.constant 0 : i32
    %c0_i32_0 = arith.constant 0 : i32
    return %arg0, %c0_i32 : i32, i32
  }
  func.func @transform_2(%arg0: i32) -> (i32, i32) {
    %c0_i32 = arith.constant 0 : i32
    %c0_i32_0 = arith.constant 0 : i32
    %c0_i32_1 = arith.constant 0 : i32
    return %c0_i32, %c0_i32_0 : i32, i32
  }
}

</mosaic_0001>

<bundles_post_ra>
// kernel: l1_mrstft_loss.6
= control target key start
LH: loop header
LB: loop body
LE: loop exit
PB: predicated region body
PF: predicated region fallthrough
CT: control target
= control target key end

     0   :  { %s2298_s9 = smov 0   ;;  %s2300_s10 = smov 0   ;;  %s2551_s0 = inlined_call_operand.vmem [shape: bf16[64,1280], index: 0, kind: input, shape index: {}]   ;;  %s2552_s1 = inlined_call_operand.vmem [shape: bf16[9,1280,256], index: 1, kind: input, shape index: {}]   ;;  %s2553_s2 = inlined_call_operand.vmem [shape: f32[2,8,384], index: 2, kind: output, shape index: {}]  }
   0x1   :  { %s2302_s11 = smov 0   ;;  %s2304_s12 = smov 0  }
   0x2   :  { %s2306_s13 = smov 0  }
   0x3 LB: > { %s21_s14 = sadd.s32 1, %s2272_s11  ;;  %s24_s15 = sadd.s32 1, %s2276_s12  ;;  %s2280_s13 = sphi %s2306_s13, %s12_s13   ;;  %s2276_s12 = sphi %s2304_s12, %s2557_s12   ;;  %s2272_s11 = sphi %s2302_s11, %s2556_s11   ;;  %s2268_s10 = sphi %s2300_s10, %s2555_s10   ;;  %s2264_s9 = sphi %s2298_s9, %s2554_s9  }
   0x4   : > { %p22_p0 = scmp.ge.s32.totalorder %s21_s14, 9  ;;  %p1660_p1 = scmp.ge.s32.totalorder %s2280_s13, 1 }
   0x5   : > { %p126_p2 = scmp.lt.s32.totalorder %s2280_s13, 19 }
   0x6   : > { %s2559_s14 = smov (%p22_p0, %s21_s14), 0  ;;  %s2561_s15 = smov (!%p22_p0, %s24_s15), %s2276_s12 }
   0x7   : > { %p127_p3 = pnand %p1660_p1, %p126_p2  ;;  %p26_p4 = scmp.ge.s32.totalorder %s2561_s15, 2 }
   0x8   : > { %s1661_s16 = sshll.u32 (!%p127_p3), %s2268_s10, 2  ;;  %p156_p5 = scmp.lt.s32.totalorder (!%p127_p3), %s2268_s10, 1 }
   0x9   : > { %s2563_s15 = smov (%p26_p4, %s2561_s15), 0  ;;  %130 = sbr.rel (%p127_p3) target bundleno = 484 (0x1e4), region = 28 }
   0xa   : > { %p150_p6 = scmp.lt.s32.totalorder (!%p127_p3), %s1661_s16, 7  ;;  %p1664_p7 = scmp.ne.s32.totalorder (!%p127_p3), %s2264_s9, 0 }
  0x10   : > { %s2565_s10 = smov (!%p156_p5, %s2268_s10), 1  ;;  %s2567_s16 = smov (!%p150_p6, %s1661_s16), 7 }
  0x11   : > { %s1914_s17 = smul.u32 24, %s2565_s10  ;;  %v2282_v0 = vmov (!%p1664_p7), 0.0  }
  0x12   : > { %s1913_s18 = smul.u32 40, %s2567_s16 }
  0x13   : > { %s2333_s21 = scalar_lea.vmem %s2553_s2, %s1914_s17  ;;  %164 = sbr.rel (%p1664_p7) target bundleno = 26 (0x1a), region = 32 }
  0x14   : > { %s2338_s24 = scalar_lea.vmem %s2551_s0, %s1913_s18  ;;  %165 = vst [vmem:[%s2333_s21] sm:$0xff] (!%p1664_p7), %v2282_v0  ;;  %166 = vst [vmem:[%s2333_s21 + $0x8] sm:$0xff] (!%p1664_p7), %v2282_v0 }
  0x15   : > { %167 = vst [vmem:[%s2333_s21 + $0x10] sm:$0xff] (!%p1664_p7), %v2282_v0 }
  0x1a PF: > { %s1848_s25 = smul.u32 1280, %s2264_s9  ;;  %v2054_v1 = vld [vmem:[%s2338_s24 + $0x4] ss:$40 sps:$4 sm:$0xff]   ;;  %v2060_v2 = vld [vmem:[%s2338_s24 + $0x14] ss:$40 sps:$4 sm:$0xff]  }
  0x1b   : > { %1283 = vmatprep.mubr.bf16.mxu1 %v2054_v1  ;;  %1389 = vmatprep.mubr.bf16.mxu0 %v2060_v2 }
  0x1c   : > { %s2349_s28 = scalar_lea.vmem %s2552_s1, %s1848_s25 }
  0x1d   : > { %v1956_v3 = vld [vmem:[%s2349_s28 + $0x4] ss:$8 sps:$4 sm:$0xff]   ;;  %v1960_v5 = vld [vmem:[%s2349_s28] ss:$8 sps:$4 sm:$0xff]   ;;  %v1962_v7 = vld [vmem:[%s2349_s28 + $0x14] ss:$8 sps:$4 sm:$0xff]  }
  0x1e   : > { %v1958_v4 = vld [vmem:[%s2349_s28 + $0x204] ss:$8 sps:$4 sm:$0xff]   ;;  %1251 = vmatprep.subr.bf16.mxu1 %v1956_v3  ;;  %v1961_v6 = vld [vmem:[%s2349_s28 + $0x200] ss:$8 sps:$4 sm:$0xff]   ;;  %v1964_v8 = vld [vmem:[%s2349_s28 + $0x214] ss:$8 sps:$4 sm:$0xff]  }
  0x1f   : > { %1357 = vmatprep.subr.bf16.mxu0 %v1958_v4  ;;  %1252 = vmatpush1.bf16.msra.mxu1 %v1960_v5  ;;  %v1966_v9 = vld [vmem:[%s2349_s28 + $0x10] ss:$8 sps:$4 sm:$0xff]   ;;  %v1968_v11 = vld [vmem:[%s2349_s28 + $0x24] ss:$8 sps:$4 sm:$0xff]   ;;  %v1972_v13 = vld [vmem:[%s2349_s28 + $0x20] ss:$8 sps:$4 sm:$0xff]  }
  0x20   : > { %1358 = vmatpush1.bf16.msra.mxu0 %v1961_v6  ;;  %1253 = vmatprep.subr.bf16.mxu1 %v1962_v7  ;;  %v1967_v10 = vld [vmem:[%s2349_s28 + $0x210] ss:$8 sps:$4 sm:$0xff]   ;;  %v1970_v12 = vld [vmem:[%s2349_s28 + $0x224] ss:$8 sps:$4 sm:$0xff]   ;;  %v1973_v14 = vld [vmem:[%s2349_s28 + $0x220] ss:$8 sps:$4 sm:$0xff]  }
  0x21   : > { %1359 = vmatprep.subr.bf16.mxu0 %v1964_v8  ;;  %v1974_v15 = vld [vmem:[%s2349_s28 + $0x34] ss:$8 sps:$4 sm:$0xff]   ;;  %v1978_v17 = vld [vmem:[%s2349_s28 + $0x30] ss:$8 sps:$4 sm:$0xff]   ;;  %v1980_v19 = vld [vmem:[%s2349_s28 + $0x44] ss:$8 sps:$4 sm:$0xff]  }
  0x22   : > { %v1976_v16 = vld [vmem:[%s2349_s28 + $0x234] ss:$8 sps:$4 sm:$0xff]   ;;  %v1979_v18 = vld [vmem:[%s2349_s28 + $0x230] ss:$8 sps:$4 sm:$0xff]   ;;  %v1982_v20 = vld [vmem:[%s2349_s28 + $0x244] ss:$8 sps:$4 sm:$0xff]  }
  0x23   : > { %1254 = vmatpush1.bf16.msra.mxu1 %v1966_v9  ;;  %v1984_v21 = vld [vmem:[%s2349_s28 + $0x40] ss:$8 sps:$4 sm:$0xff]   ;;  %v1986_v23 = vld [vmem:[%s2349_s28 + $0x54] ss:$8 sps:$4 sm:$0xff]   ;;  %v1990_v25 = vld [vmem:[%s2349_s28 + $0x50] ss:$8 sps:$4 sm:$0xff]  }
  0x24   : > { %1360 = vmatpush1.bf16.msra.mxu0 %v1967_v10  ;;  %1255 = vmatprep.subr.bf16.mxu1 %v1968_v11  ;;  %v1985_v22 = vld [vmem:[%s2349_s28 + $0x240] ss:$8 sps:$4 sm:$0xff]   ;;  %v1988_v24 = vld [vmem:[%s2349_s28 + $0x254] ss:$8 sps:$4 sm:$0xff]   ;;  %v1991_v26 = vld [vmem:[%s2349_s28 + $0x250] ss:$8 sps:$4 sm:$0xff]  }
  0x25   : > { %1361 = vmatprep.subr.bf16.mxu0 %v1970_v12  ;;  %v1992_v27 = vld [vmem:[%s2349_s28 + $0x64] ss:$8 sps:$4 sm:$0xff]   ;;  %v1996_v29 = vld [vmem:[%s2349_s28 + $0x60] ss:$8 sps:$4 sm:$0xff]   ;;  %v1998_v31 = vld [vmem:[%s2349_s28 + $0x74] ss:$8 sps:$4 sm:$0xff]  }
  0x26   : > { %v1994_v28 = vld [vmem:[%s2349_s28 + $0x264] ss:$8 sps:$4 sm:$0xff]   ;;  %v1997_v30 = vld [vmem:[%s2349_s28 + $0x260] ss:$8 sps:$4 sm:$0xff]   ;;  %v2000_v32 = vld [vmem:[%s2349_s28 + $0x274] ss:$8 sps:$4 sm:$0xff]  }
  0x27   : > { %1256 = vmatpush1.bf16.msra.mxu1 %v1972_v13  ;;  %v2002_v33 = vld [vmem:[%s2349_s28 + $0x70] ss:$8 sps:$4 sm:$0xff]   ;;  %v2004_v35 = vld [vmem:[%s2349_s28 + $0x84] ss:$8 sps:$4 sm:$0xff]   ;;  %v2008_v37 = vld [vmem:[%s2349_s28 + $0x80] ss:$8 sps:$4 sm:$0xff]  }
  0x28   : > { %1362 = vmatpush1.bf16.msra.mxu0 %v1973_v14  ;;  %1257 = vmatprep.subr.bf16.mxu1 %v1974_v15  ;;  %v2003_v34 = vld [vmem:[%s2349_s28 + $0x270] ss:$8 sps:$4 sm:$0xff]   ;;  %v2006_v36 = vld [vmem:[%s2349_s28 + $0x284] ss:$8 sps:$4 sm:$0xff]   ;;  %v2009_v38 = vld [vmem:[%s2349_s28 + $0x280] ss:$8 sps:$4 sm:$0xff]  }
  0x29   : > { %1363 = vmatprep.subr.bf16.mxu0 %v1976_v16  ;;  %v2010_v39 = vld [vmem:[%s2349_s28 + $0x94] ss:$8 sps:$4 sm:$0xff]   ;;  %v2014_v41 = vld [vmem:[%s2349_s28 + $0x90] ss:$8 sps:$4 sm:$0xff]   ;;  %v2016_v43 = vld [vmem:[%s2349_s28 + $0xa4] ss:$8 sps:$4 sm:$0xff]  }
  0x2a   : > { %v2012_v40 = vld [vmem:[%s2349_s28 + $0x294] ss:$8 sps:$4 sm:$0xff]   ;;  %v2015_v42 = vld [vmem:[%s2349_s28 + $0x290] ss:$8 sps:$4 sm:$0xff]   ;;  %v2018_v44 = vld [vmem:[%s2349_s28 + $0x2a4] ss:$8 sps:$4 sm:$0xff]  }
  0x2b   : > { %1258 = vmatpush1.bf16.msra.mxu1 %v1978_v17  ;;  %v2020_v45 = vld [vmem:[%s2349_s28 + $0xa0] ss:$8 sps:$4 sm:$0xff]   ;;  %v2022_v47 = vld [vmem:[%s2349_s28 + $0xb4] ss:$8 sps:$4 sm:$0xff]   ;;  %v2026_v49 = vld [vmem:[%s2349_s28 + $0xb0] ss:$8 sps:$4 sm:$0xff]  }
  0x2c   : > { %1364 = vmatpush1.bf16.msra.mxu0 %v1979_v18  ;;  %1259 = vmatprep.subr.bf16.mxu1 %v1980_v19  ;;  %v2021_v46 = vld [vmem:[%s2349_s28 + $0x2a0] ss:$8 sps:$4 sm:$0xff]   ;;  %v2024_v48 = vld [vmem:[%s2349_s28 + $0x2b4] ss:$8 sps:$4 sm:$0xff]   ;;  %v2027_v50 = vld [vmem:[%s2349_s28 + $0x2b0] ss:$8 sps:$4 sm:$0xff]  }
  0x2d   : > { %1365 = vmatprep.subr.bf16.mxu0 %v1982_v20  ;;  %v2028_v51 = vld [vmem:[%s2349_s28 + $0xc4] ss:$8 sps:$4 sm:$0xff]   ;;  %v2032_v53 = vld [vmem:[%s2349_s28 + $0xc0] ss:$8 sps:$4 sm:$0xff]   ;;  %v2034_v55 = vld [vmem:[%s2349_s28 + $0xd4] ss:$8 sps:$4 sm:$0xff]  }
  0x2e   : > { %v2030_v52 = vld [vmem:[%s2349_s28 + $0x2c4] ss:$8 sps:$4 sm:$0xff]   ;;  %v2033_v54 = vld [vmem:[%s2349_s28 + $0x2c0] ss:$8 sps:$4 sm:$0xff]   ;;  %v2036_v56 = vld [vmem:[%s2349_s28 + $0x2d4] ss:$8 sps:$4 sm:$0xff]  }
  0x2f   : > { %1260 = vmatpush1.bf16.msra.mxu1 %v1984_v21  ;;  %v2038_v57 = vld [vmem:[%s2349_s28 + $0xd0] ss:$8 sps:$4 sm:$0xff]   ;;  %v2040_v59 = vld [vmem:[%s2349_s28 + $0xe4] ss:$8 sps:$4 sm:$0xff]   ;;  %v2044_v61 = vld [vmem:[%s2349_s28 + $0xe0] ss:$8 sps:$4 sm:$0xff]  }
  0x30   : > { %1366 = vmatpush1.bf16.msra.mxu0 %v1985_v22  ;;  %1261 = vmatprep.subr.bf16.mxu1 %v1986_v23  ;;  %v2039_v58 = vld [vmem:[%s2349_s28 + $0x2d0] ss:$8 sps:$4 sm:$0xff]   ;;  %v2042_v60 = vld [vmem:[%s2349_s28 + $0x2e4] ss:$8 sps:$4 sm:$0xff]   ;;  %v2045_v62 = vld [vmem:[%s2349_s28 + $0x2e0] ss:$8 sps:$4 sm:$0xff]  }
  0x31   : > { %1367 = vmatprep.subr.bf16.mxu0 %v1988_v24  ;;  %v2046_v63 = vld [vmem:[%s2349_s28 + $0xf4] ss:$8 sps:$4 sm:$0xff]   ;;  %v2050_v1 = vld [vmem:[%s2349_s28 + $0xf0] ss:$8 sps:$4 sm:$0xff]   ;;  %v2057_v3 = vld [vmem:[%s2349_s28 + $0x104] ss:$8 sps:$4 sm:$0xff]  }
  0x32   : > { %v2048_v0 = vld [vmem:[%s2349_s28 + $0x2f4] ss:$8 sps:$4 sm:$0xff]   ;;  %v2051_v2 = vld [vmem:[%s2349_s28 + $0x2f0] ss:$8 sps:$4 sm:$0xff]   ;;  %v2063_v4 = vld [vmem:[%s2349_s28 + $0x304] ss:$8 sps:$4 sm:$0xff]  }
  0x33   : > { %1262 = vmatpush1.bf16.msra.mxu1 %v1990_v25  ;;  %v2052_v5 = vld [vmem:[%s2338_s24] ss:$40 sps:$4 sm:$0xff]   ;;  %v2058_v6 = vld [vmem:[%s2338_s24 + $0x10] ss:$40 sps:$4 sm:$0xff]   ;;  %v2066_v9 = vld [vmem:[%s2349_s28 + $0x114] ss:$8 sps:$4 sm:$0xff]  }
  0x34   : > { %1368 = vmatpush1.bf16.msra.mxu0 %v1991_v26  ;;  %1263 = vmatprep.subr.bf16.mxu1 %v1992_v27  ;;  %v2055_v7 = vld [vmem:[%s2349_s28 + $0x100] ss:$8 sps:$4 sm:$0xff]   ;;  %v2069_v10 = vld [vmem:[%s2349_s28 + $0x314] ss:$8 sps:$4 sm:$0xff]   ;;  %v2064_v11 = vld [vmem:[%s2349_s28 + $0x110] ss:$8 sps:$4 sm:$0xff]  }
  0x35   : > { %1369 = vmatprep.subr.bf16.mxu0 %v1994_v28  ;;  %v2061_v8 = vld [vmem:[%s2349_s28 + $0x300] ss:$8 sps:$4 sm:$0xff]   ;;  %v2067_v12 = vld [vmem:[%s2349_s28 + $0x310] ss:$8 sps:$4 sm:$0xff]   ;;  %v2072_v13 = vld [vmem:[%s2349_s28 + $0x124] ss:$8 sps:$4 sm:$0xff]  }
  0x36   : > { %v2075_v14 = vld [vmem:[%s2349_s28 + $0x324] ss:$8 sps:$4 sm:$0xff]   ;;  %v2070_v15 = vld [vmem:[%s2349_s28 + $0x120] ss:$8 sps:$4 sm:$0xff]   ;;  %v2078_v17 = vld [vmem:[%s2349_s28 + $0x134] ss:$8 sps:$4 sm:$0xff]  }
  0x37   : > { %1264 = vmatpush1.bf16.msra.mxu1 %v1996_v29  ;;  %v2073_v16 = vld [vmem:[%s2349_s28 + $0x320] ss:$8 sps:$4 sm:$0xff]   ;;  %v2081_v18 = vld [vmem:[%s2349_s28 + $0x334] ss:$8 sps:$4 sm:$0xff]   ;;  %v2076_v19 = vld [vmem:[%s2349_s28 + $0x130] ss:$8 sps:$4 sm:$0xff]  }
  0x38   : > { %1370 = vmatpush1.bf16.msra.mxu0 %v1997_v30  ;;  %1265 = vmatprep.subr.bf16.mxu1 %v1998_v31  ;;  %v2079_v20 = vld [vmem:[%s2349_s28 + $0x330] ss:$8 sps:$4 sm:$0xff]   ;;  %v2084_v21 = vld [vmem:[%s2349_s28 + $0x144] ss:$8 sps:$4 sm:$0xff]   ;;  %v2082_v23 = vld [vmem:[%s2349_s28 + $0x140] ss:$8 sps:$4 sm:$0xff]  }
  0x39   : > { %1371 = vmatprep.subr.bf16.mxu0 %v2000_v32  ;;  %v2087_v22 = vld [vmem:[%s2349_s28 + $0x344] ss:$8 sps:$4 sm:$0xff]   ;;  %v2085_v24 = vld [vmem:[%s2349_s28 + $0x340] ss:$8 sps:$4 sm:$0xff]   ;;  %v2090_v25 = vld [vmem:[%s2349_s28 + $0x154] ss:$8 sps:$4 sm:$0xff]  }
  0x3a   : > { %v2093_v26 = vld [vmem:[%s2349_s28 + $0x354] ss:$8 sps:$4 sm:$0xff]   ;;  %v2144_v28 = vld [vmem:[%s2338_s24 + $0x64] ss:$40 sps:$4 sm:$0xff]   ;;  %v2146_v29 = vld [vmem:[%s2338_s24 + $0x50] ss:$40 sps:$4 sm:$0xff]  }
  0x3b   : > { %1266 = vmatpush1.bf16.msra.mxu1 %v2002_v33  ;;  %v2142_v27 = vld [vmem:[%s2338_s24 + $0x54] ss:$40 sps:$4 sm:$0xff]   ;;  %v2088_v30 = vld [vmem:[%s2349_s28 + $0x150] ss:$8 sps:$4 sm:$0xff]   ;;  %v2150_v31 = vld [vmem:[%s2338_s24 + $0x60] ss:$40 sps:$4 sm:$0xff]  }
  0x3c   : > { %1372 = vmatpush1.bf16.msra.mxu0 %v2003_v34  ;;  %1267 = vmatprep.subr.bf16.mxu1 %v2004_v35  ;;  %v2091_v32 = vld [vmem:[%s2349_s28 + $0x350] ss:$8 sps:$4 sm:$0xff]   ;;  %v2096_v33 = vld [vmem:[%s2349_s28 + $0x164] ss:$8 sps:$4 sm:$0xff]   ;;  %v2094_v35 = vld [vmem:[%s2349_s28 + $0x160] ss:$8 sps:$4 sm:$0xff]  }
  0x3d   : > { %1373 = vmatprep.subr.bf16.mxu0 %v2006_v36  ;;  %v2099_v34 = vld [vmem:[%s2349_s28 + $0x364] ss:$8 sps:$4 sm:$0xff]   ;;  %v2097_v36 = vld [vmem:[%s2349_s28 + $0x360] ss:$8 sps:$4 sm:$0xff]  }
  0x3f   : > { %1268 = vmatpush1.bf16.msra.mxu1 %v2008_v37  ;;  %v2102_v37 = vld [vmem:[%s2349_s28 + $0x174] ss:$8 sps:$4 sm:$0xff]  }
  0x40   : > { %1374 = vmatpush1.bf16.msra.mxu0 %v2009_v38  ;;  %1269 = vmatprep.subr.bf16.mxu1 %v2010_v39  ;;  %v2162_v38 = vld [vmem:[%s2338_s24 + $0xc] ss:$40 sps:$4 sm:$0xff]  }
  0x41   : > { %1375 = vmatprep.subr.bf16.mxu0 %v2012_v40  ;;  %v2105_v39 = vld [vmem:[%s2349_s28 + $0x374] ss:$8 sps:$4 sm:$0xff]  }
  0x42   : > { %v2165_v40 = vld [vmem:[%s2338_s24 + $0x1c] ss:$40 sps:$4 sm:$0xff]  }
  0x43   : > { %1270 = vmatpush1.bf16.msra.mxu1 %v2014_v41  ;;  %v2100_v41 = vld [vmem:[%s2349_s28 + $0x170] ss:$8 sps:$4 sm:$0xff]  }
  0x44   : > { %1376 = vmatpush1.bf16.msra.mxu0 %v2015_v42  ;;  %1271 = vmatprep.subr.bf16.mxu1 %v2016_v43  ;;  %v2103_v42 = vld [vmem:[%s2349_s28 + $0x370] ss:$8 sps:$4 sm:$0xff]   ;;  %v2108_v43 = vld [vmem:[%s2349_s28 + $0x184] ss:$8 sps:$4 sm:$0xff]  }
  0x45   : > { %1377 = vmatprep.subr.bf16.mxu0 %v2018_v44  ;;  %v2111_v44 = vld [vmem:[%s2349_s28 + $0x384] ss:$8 sps:$4 sm:$0xff]  }
  0x47   : > { %1272 = vmatpush1.bf16.msra.mxu1 %v2020_v45  ;;  %v2106_v45 = vld [vmem:[%s2349_s28 + $0x180] ss:$8 sps:$4 sm:$0xff]  }
  0x48   : > { %1378 = vmatpush1.bf16.msra.mxu0 %v2021_v46  ;;  %1273 = vmatprep.subr.bf16.mxu1 %v2022_v47  ;;  %v2109_v46 = vld [vmem:[%s2349_s28 + $0x380] ss:$8 sps:$4 sm:$0xff]   ;;  %v2114_v47 = vld [vmem:[%s2349_s28 + $0x194] ss:$8 sps:$4 sm:$0xff]  }
  0x49   : > { %1379 = vmatprep.subr.bf16.mxu0 %v2024_v48  ;;  %v2117_v48 = vld [vmem:[%s2349_s28 + $0x394] ss:$8 sps:$4 sm:$0xff]  }
  0x4b   : > { %1274 = vmatpush1.bf16.msra.mxu1 %v2026_v49  ;;  %v2112_v49 = vld [vmem:[%s2349_s28 + $0x190] ss:$8 sps:$4 sm:$0xff]  }
  0x4c   : > { %1380 = vmatpush1.bf16.msra.mxu0 %v2027_v50  ;;  %1275 = vmatprep.subr.bf16.mxu1 %v2028_v51  ;;  %v2115_v50 = vld [vmem:[%s2349_s28 + $0x390] ss:$8 sps:$4 sm:$0xff]   ;;  %v2120_v51 = vld [vmem:[%s2349_s28 + $0x1a4] ss:$8 sps:$4 sm:$0xff]  }
  0x4d   : > { %1381 = vmatprep.subr.bf16.mxu0 %v2030_v52  ;;  %v2123_v52 = vld [vmem:[%s2349_s28 + $0x3a4] ss:$8 sps:$4 sm:$0xff]  }
  0x4f   : > { %1276 = vmatpush1.bf16.msra.mxu1 %v2032_v53  ;;  %v2118_v53 = vld [vmem:[%s2349_s28 + $0x1a0] ss:$8 sps:$4 sm:$0xff]  }
  0x50   : > { %1382 = vmatpush1.bf16.msra.mxu0 %v2033_v54  ;;  %1277 = vmatprep.subr.bf16.mxu1 %v2034_v55  ;;  %v2121_v54 = vld [vmem:[%s2349_s28 + $0x3a0] ss:$8 sps:$4 sm:$0xff]   ;;  %v2126_v55 = vld [vmem:[%s2349_s28 + $0x1b4] ss:$8 sps:$4 sm:$0xff]  }
  0x51   : > { %1383 = vmatprep.subr.bf16.mxu0 %v2036_v56  ;;  %v2129_v56 = vld [vmem:[%s2349_s28 + $0x3b4] ss:$8 sps:$4 sm:$0xff]  }
  0x53   : > { %1278 = vmatpush1.bf16.msra.mxu1 %v2038_v57  ;;  %v2124_v57 = vld [vmem:[%s2349_s28 + $0x1b0] ss:$8 sps:$4 sm:$0xff]  }
  0x54   : > { %1384 = vmatpush1.bf16.msra.mxu0 %v2039_v58  ;;  %1279 = vmatprep.subr.bf16.mxu1 %v2040_v59  ;;  %v2127_v58 = vld [vmem:[%s2349_s28 + $0x3b0] ss:$8 sps:$4 sm:$0xff]   ;;  %v2132_v59 = vld [vmem:[%s2349_s28 + $0x1c4] ss:$8 sps:$4 sm:$0xff]  }
  0x55   : > { %1385 = vmatprep.subr.bf16.mxu0 %v2042_v60  ;;  %v2135_v60 = vld [vmem:[%s2349_s28 + $0x3c4] ss:$8 sps:$4 sm:$0xff]  }
  0x57   : > { %1280 = vmatpush1.bf16.msra.mxu1 %v2044_v61  ;;  %v2130_v61 = vld [vmem:[%s2349_s28 + $0x1c0] ss:$8 sps:$4 sm:$0xff]  }
  0x58   : > { %1386 = vmatpush1.bf16.msra.mxu0 %v2045_v62  ;;  %1281 = vmatprep.subr.bf16.mxu1 %v2046_v63  ;;  %v2133_v62 = vld [vmem:[%s2349_s28 + $0x3c0] ss:$8 sps:$4 sm:$0xff]   ;;  %v2138_v63 = vld [vmem:[%s2349_s28 + $0x1d4] ss:$8 sps:$4 sm:$0xff]  }
  0x59   : > { %1387 = vmatprep.subr.bf16.mxu0 %v2048_v0  ;;  %v2141_v0 = vld [vmem:[%s2349_s28 + $0x3d4] ss:$8 sps:$4 sm:$0xff]  }
  0x5b   : > { %1282 = vmatpush1.bf16.msra.mxu1 %v2050_v1  ;;  %v2136_v1 = vld [vmem:[%s2349_s28 + $0x1d0] ss:$8 sps:$4 sm:$0xff]  }
  0x5c   : > { %1388 = vmatpush1.bf16.msra.mxu0 %v2051_v2  ;;  %1304 = vmatprep.subr.bf16.mxu1 %v2057_v3  ;;  %v2139_v2 = vld [vmem:[%s2349_s28 + $0x3d0] ss:$8 sps:$4 sm:$0xff]   ;;  %v2149_v3 = vld [vmem:[%s2349_s28 + $0x1e4] ss:$8 sps:$4 sm:$0xff]  }
  0x5d   : > { %1410 = vmatprep.subr.bf16.mxu0 %v2063_v4  ;;  %v2153_v4 = vld [vmem:[%s2349_s28 + $0x3e4] ss:$8 sps:$4 sm:$0xff]  }
  0x5e   : > { %1284 = vmatmul.mubr.bf16.vlgmr.msra.gmra.mrb[0].mxu1 %v2052_v5  ;;  %v2147_v5 = vld [vmem:[%s2349_s28 + $0x1e0] ss:$8 sps:$4 sm:$0xff]  }
  0x5f   : > { %1390 = vmatmul.mubr.bf16.vlgmr.msra.gmra.mrb[0].mxu0 %v2058_v6  ;;  %1305 = vmatpush1.bf16.msra.mxu1 %v2055_v7  ;;  %v2151_v6 = vld [vmem:[%s2349_s28 + $0x3e0] ss:$8 sps:$4 sm:$0xff]   ;;  %v2156_v7 = vld [vmem:[%s2349_s28 + $0x1f4] ss:$8 sps:$4 sm:$0xff]  }
  0x60   : > { %1411 = vmatpush1.bf16.msra.mxu0 %v2061_v8  ;;  %1306 = vmatprep.subr.bf16.mxu1 %v2066_v9  ;;  %v2159_v8 = vld [vmem:[%s2349_s28 + $0x3f4] ss:$8 sps:$4 sm:$0xff]   ;;  %v2154_v9 = vld [vmem:[%s2349_s28 + $0x1f0] ss:$8 sps:$4 sm:$0xff]  }
  0x61   : > { %1412 = vmatprep.subr.bf16.mxu0 %v2069_v10  ;;  %1293 = vmatprep.mubr.bf16.mxu1 %v2142_v27  ;;  %v2157_v10 = vld [vmem:[%s2349_s28 + $0x3f0] ss:$8 sps:$4 sm:$0xff]   ;;  %v2186_v27 = vld [vmem:[%s2349_s28 + $0x444] ss:$8 sps:$4 sm:$0xff]  }
  0x62   : > { %1399 = vmatprep.mubr.bf16.mxu0 %v2144_v28  ;;  %v2184_v28 = vld [vmem:[%s2349_s28 + $0x440] ss:$8 sps:$4 sm:$0xff]  }
  0x63   : > { %1307 = vmatpush1.bf16.msra.mxu1 %v2064_v11  ;;  %v2168_v11 = vld [vmem:[%s2349_s28 + $0x404] ss:$8 sps:$4 sm:$0xff]  }
  0x64   : > { %1413 = vmatpush1.bf16.msra.mxu0 %v2067_v12  ;;  %1308 = vmatprep.subr.bf16.mxu1 %v2072_v13  ;;  %v2160_v12 = vld [vmem:[%s2338_s24 + $0x8] ss:$40 sps:$4 sm:$0xff]   ;;  %v2163_v13 = vld [vmem:[%s2338_s24 + $0x18] ss:$40 sps:$4 sm:$0xff]  }
  0x65   : > { %1414 = vmatprep.subr.bf16.mxu0 %v2075_v14  ;;  %v2166_v14 = vld [vmem:[%s2349_s28 + $0x400] ss:$8 sps:$4 sm:$0xff]  }
  0x66   : > { %1294 = vmatmul.mubr.bf16.gmra.mrb[4].mxu1 %v2146_v29  ;;  %v2189_v29 = vld [vmem:[%s2349_s28 + $0x454] ss:$8 sps:$4 sm:$0xff]  }
  0x67   : > { %1309 = vmatpush1.bf16.msra.mxu1 %v2070_v15  ;;  %1400 = vmatmul.mubr.bf16.gmra.mrb[4].mxu0 %v2150_v31  ;;  %v2171_v15 = vld [vmem:[%s2349_s28 + $0x414] ss:$8 sps:$4 sm:$0xff]   ;;  %v2192_v31 = vld [vmem:[%s2349_s28 + $0x464] ss:$8 sps:$4 sm:$0xff]  }
  0x68   : > { %1415 = vmatpush1.bf16.msra.mxu0 %v2073_v16  ;;  %1310 = vmatprep.subr.bf16.mxu1 %v2078_v17  ;;  %v2172_v16 = vld [vmem:[%s2338_s24 + $0x5c] ss:$40 sps:$4 sm:$0xff]   ;;  %v2174_v17 = vld [vmem:[%s2338_s24 + $0x6c] ss:$40 sps:$4 sm:$0xff]  }
  0x69   : > { %1416 = vmatprep.subr.bf16.mxu0 %v2081_v18  ;;  %1336 = vmatprep.mubr.bf16.mxu1 %v2162_v38  ;;  %v2169_v18 = vld [vmem:[%s2349_s28 + $0x410] ss:$8 sps:$4 sm:$0xff]  }
  0x6a   : > { %1442 = vmatprep.mubr.bf16.mxu0 %v2165_v40  ;;  %v2199_v38 = vld [vmem:[%s2349_s28 + $0x490] ss:$8 sps:$4 sm:$0xff]   ;;  %v2202_v40 = vld [vmem:[%s2349_s28 + $0x4a0] ss:$8 sps:$4 sm:$0xff]  }
  0x6b   : > { %1311 = vmatpush1.bf16.msra.mxu1 %v2076_v19  ;;  %v2180_v19 = vld [vmem:[%s2349_s28 + $0x424] ss:$8 sps:$4 sm:$0xff]  }
  0x6c   : > { %1417 = vmatpush1.bf16.msra.mxu0 %v2079_v20  ;;  %1312 = vmatprep.subr.bf16.mxu1 %v2084_v21  ;;  %v2176_v20 = vld [vmem:[%s2338_s24 + $0x58] ss:$40 sps:$4 sm:$0xff]   ;;  %v2177_v21 = vld [vmem:[%s2338_s24 + $0x68] ss:$40 sps:$4 sm:$0xff]  }
  0x6d   : > { %1418 = vmatprep.subr.bf16.mxu0 %v2087_v22  ;;  %v2178_v22 = vld [vmem:[%s2349_s28 + $0x420] ss:$8 sps:$4 sm:$0xff]  }
  0x6f   : > { %1313 = vmatpush1.bf16.msra.mxu1 %v2082_v23  ;;  %v2183_v23 = vld [vmem:[%s2349_s28 + $0x434] ss:$8 sps:$4 sm:$0xff]  }
  0x70   : > { %1419 = vmatpush1.bf16.msra.mxu0 %v2085_v24  ;;  %1314 = vmatprep.subr.bf16.mxu1 %v2090_v25  ;;  %v2222_v24 = vld [vmem:[%s2338_s24 + $0x24] ss:$40 sps:$4 sm:$0xff]   ;;  %v2225_v25 = vld [vmem:[%s2338_s24 + $0x74] ss:$40 sps:$4 sm:$0xff]  }
  0x71   : > { %1420 = vmatprep.subr.bf16.mxu0 %v2093_v26  ;;  %v2181_v26 = vld [vmem:[%s2349_s28 + $0x430] ss:$8 sps:$4 sm:$0xff]  }
  0x73   : > { %1315 = vmatpush1.bf16.msra.mxu1 %v2088_v30  ;;  %v2187_v30 = vld [vmem:[%s2349_s28 + $0x450] ss:$8 sps:$4 sm:$0xff]  }
  0x74   : > { %1421 = vmatpush1.bf16.msra.mxu0 %v2091_v32  ;;  %1316 = vmatprep.subr.bf16.mxu1 %v2096_v33  ;;  %v2190_v32 = vld [vmem:[%s2349_s28 + $0x460] ss:$8 sps:$4 sm:$0xff]   ;;  %v2195_v33 = vld [vmem:[%s2349_s28 + $0x474] ss:$8 sps:$4 sm:$0xff]  }
  0x75   : > { %1422 = vmatprep.subr.bf16.mxu0 %v2099_v34  ;;  %v2193_v34 = vld [vmem:[%s2349_s28 + $0x470] ss:$8 sps:$4 sm:$0xff]  }
  0x77   : > { %1317 = vmatpush1.bf16.msra.mxu1 %v2094_v35  ;;  %v2198_v35 = vld [vmem:[%s2349_s28 + $0x484] ss:$8 sps:$4 sm:$0xff]  }
  0x78   : > { %1423 = vmatpush1.bf16.msra.mxu0 %v2097_v36  ;;  %1318 = vmatprep.subr.bf16.mxu1 %v2102_v37  ;;  %v2196_v36 = vld [vmem:[%s2349_s28 + $0x480] ss:$8 sps:$4 sm:$0xff]   ;;  %v2201_v37 = vld [vmem:[%s2349_s28 + $0x494] ss:$8 sps:$4 sm:$0xff]  }
  0x79   : > { %1424 = vmatprep.subr.bf16.mxu0 %v2105_v39  ;;  %v2204_v39 = vld [vmem:[%s2349_s28 + $0x4a4] ss:$8 sps:$4 sm:$0xff]  }
  0x7b   : > { %1319 = vmatpush1.bf16.msra.mxu1 %v2100_v41  ;;  %v2207_v41 = vld [vmem:[%s2349_s28 + $0x4b4] ss:$8 sps:$4 sm:$0xff]  }
  0x7c   : > { %1425 = vmatpush1.bf16.msra.mxu0 %v2103_v42  ;;  %1320 = vmatprep.subr.bf16.mxu1 %v2108_v43  ;;  %v2205_v42 = vld [vmem:[%s2349_s28 + $0x4b0] ss:$8 sps:$4 sm:$0xff]   ;;  %v2210_v43 = vld [vmem:[%s2349_s28 + $0x4c4] ss:$8 sps:$4 sm:$0xff]  }
  0x7d   : > { %1426 = vmatprep.subr.bf16.mxu0 %v2111_v44  ;;  %v2208_v44 = vld [vmem:[%s2349_s28 + $0x4c0] ss:$8 sps:$4 sm:$0xff]  }
  0x7f   : > { %1321 = vmatpush1.bf16.msra.mxu1 %v2106_v45  ;;  %v2213_v45 = vld [vmem:[%s2349_s28 + $0x4d4] ss:$8 sps:$4 sm:$0xff]  }
  0x80   : > { %1427 = vmatpush1.bf16.msra.mxu0 %v2109_v46  ;;  %1322 = vmatprep.subr.bf16.mxu1 %v2114_v47  ;;  %v2211_v46 = vld [vmem:[%s2349_s28 + $0x4d0] ss:$8 sps:$4 sm:$0xff]   ;;  %v2216_v47 = vld [vmem:[%s2349_s28 + $0x4e4] ss:$8 sps:$4 sm:$0xff]  }
  0x81   : > { %1428 = vmatprep.subr.bf16.mxu0 %v2117_v48  ;;  %v2214_v48 = vld [vmem:[%s2349_s28 + $0x4e0] ss:$8 sps:$4 sm:$0xff]  }
  0x83   : > { %1323 = vmatpush1.bf16.msra.mxu1 %v2112_v49  ;;  %v2219_v49 = vld [vmem:[%s2349_s28 + $0x4f4] ss:$8 sps:$4 sm:$0xff]  }
  0x84   : > { %1429 = vmatpush1.bf16.msra.mxu0 %v2115_v50  ;;  %1324 = vmatprep.subr.bf16.mxu1 %v2120_v51  ;;  %v2217_v50 = vld [vmem:[%s2349_s28 + $0x4f0] ss:$8 sps:$4 sm:$0xff]   ;;  %v2220_v51 = vld [vmem:[%s2338_s24 + $0x20] ss:$40 sps:$4 sm:$0xff]  }
  0x85   : > { %1430 = vmatprep.subr.bf16.mxu0 %v2123_v52  ;;  %v2223_v52 = vld [vmem:[%s2338_s24 + $0x70] ss:$40 sps:$4 sm:$0xff]  }
  0x87   : > { %1325 = vmatpush1.bf16.msra.mxu1 %v2118_v53 }
  0x88   : > { %1431 = vmatpush1.bf16.msra.mxu0 %v2121_v54  ;;  %1326 = vmatprep.subr.bf16.mxu1 %v2126_v55 }
  0x89   : > { %1432 = vmatprep.subr.bf16.mxu0 %v2129_v56 }
  0x8b   : > { %1327 = vmatpush1.bf16.msra.mxu1 %v2124_v57 }
  0x8c   : > { %1433 = vmatpush1.bf16.msra.mxu0 %v2127_v58  ;;  %1328 = vmatprep.subr.bf16.mxu1 %v2132_v59 }
  0x8d   : > { %1434 = vmatprep.subr.bf16.mxu0 %v2135_v60 }
  0x8f   : > { %1329 = vmatpush1.bf16.msra.mxu1 %v2130_v61 }
  0x90   : > { %1435 = vmatpush1.bf16.msra.mxu0 %v2133_v62  ;;  %1330 = vmatprep.subr.bf16.mxu1 %v2138_v63 }
  0x91   : > { %1436 = vmatprep.subr.bf16.mxu0 %v2141_v0 }
  0x93   : > { %1331 = vmatpush1.bf16.msra.mxu1 %v2136_v1 }
  0x94   : > { %1437 = vmatpush1.bf16.msra.mxu0 %v2139_v2  ;;  %1332 = vmatprep.subr.bf16.mxu1 %v2149_v3 }
  0x95   : > { %1438 = vmatprep.subr.bf16.mxu0 %v2153_v4 }
  0x97   : > { %1333 = vmatpush1.bf16.msra.mxu1 %v2147_v5 }
  0x98   : > { %1439 = vmatpush1.bf16.msra.mxu0 %v2151_v6  ;;  %1334 = vmatprep.subr.bf16.mxu1 %v2156_v7 }
  0x99   : > { %1440 = vmatprep.subr.bf16.mxu0 %v2159_v8 }
  0x9b   : > { %1335 = vmatpush1.bf16.msra.mxu1 %v2154_v9 }
  0x9c   : > { %1441 = vmatpush1.bf16.msra.mxu0 %v2157_v10  ;;  %1849 = vmatprep.subr.bf16.mxu1 %v2168_v11 }
  0x9d   : > { %1463 = vmatprep.subr.bf16.mxu0 %v2168_v11 }
  0x9e   : > { %1337 = vmatmul.mubr.bf16.vlgmr.msra.gmra.mrb[0].mxu1 %v2160_v12 }
  0x9f   : > { %1443 = vmatmul.mubr.bf16.vlgmr.msra.gmra.mrb[0].mxu0 %v2163_v13  ;;  %1865 = vmatpush1.bf16.msra.mxu1 %v2166_v14 }
  0xa0   : > { %1464 = vmatpush1.bf16.msra.mxu0 %v2166_v14  ;;  %1850 = vmatprep.subr.bf16.mxu1 %v2171_v15 }
  0xa1   : > { %1465 = vmatprep.subr.bf16.mxu0 %v2171_v15  ;;  %1346 = vmatprep.mubr.bf16.mxu1 %v2172_v16 }
  0xa2   : > { %1452 = vmatprep.mubr.bf16.mxu0 %v2174_v17 }
  0xa3   : > { %1866 = vmatpush1.bf16.msra.mxu1 %v2169_v18 }
  0xa4   : > { %1466 = vmatpush1.bf16.msra.mxu0 %v2169_v18  ;;  %1851 = vmatprep.subr.bf16.mxu1 %v2180_v19 }
  0xa5   : > { %1467 = vmatprep.subr.bf16.mxu0 %v2180_v19 }
  0xa6   : > { %1347 = vmatmul.mubr.bf16.gmra.mrb[4].mxu1 %v2176_v20 }
  0xa7   : > { %1453 = vmatmul.mubr.bf16.gmra.mrb[4].mxu0 %v2177_v21  ;;  %1867 = vmatpush1.bf16.msra.mxu1 %v2178_v22 }
  0xa8   : > { %1468 = vmatpush1.bf16.msra.mxu0 %v2178_v22  ;;  %1852 = vmatprep.subr.bf16.mxu1 %v2183_v23 }
  0xa9   : > { %1469 = vmatprep.subr.bf16.mxu0 %v2183_v23  ;;  %1495 = vmatprep.mubr.bf16.mxu0 %v2222_v24 }
  0xaa   : > { %1505 = vmatprep.mubr.bf16.mxu1 %v2225_v25 }
  0xab   : > { %1868 = vmatpush1.bf16.msra.mxu1 %v2181_v26 }
  0xac   : > { %1470 = vmatpush1.bf16.msra.mxu0 %v2181_v26  ;;  %1853 = vmatprep.subr.bf16.mxu1 %v2186_v27 }
  0xad   : > { %1471 = vmatprep.subr.bf16.mxu0 %v2186_v27 }
  0xaf   : > { %1869 = vmatpush1.bf16.msra.mxu1 %v2184_v28 }
  0xb0   : > { %1472 = vmatpush1.bf16.msra.mxu0 %v2184_v28  ;;  %1854 = vmatprep.subr.bf16.mxu1 %v2189_v29 }
  0xb1   : > { %1473 = vmatprep.subr.bf16.mxu0 %v2189_v29 }
  0xb3   : > { %1870 = vmatpush1.bf16.msra.mxu1 %v2187_v30 }
  0xb4   : > { %1474 = vmatpush1.bf16.msra.mxu0 %v2187_v30  ;;  %1855 = vmatprep.subr.bf16.mxu1 %v2192_v31 }
  0xb5   : > { %1475 = vmatprep.subr.bf16.mxu0 %v2192_v31 }
  0xb7   : > { %1871 = vmatpush1.bf16.msra.mxu1 %v2190_v32 }
  0xb8   : > { %1476 = vmatpush1.bf16.msra.mxu0 %v2190_v32  ;;  %1856 = vmatprep.subr.bf16.mxu1 %v2195_v33 }
  0xb9   : > { %1477 = vmatprep.subr.bf16.mxu0 %v2195_v33 }
  0xbb   : > { %1872 = vmatpush1.bf16.msra.mxu1 %v2193_v34 }
  0xbc   : > { %1478 = vmatpush1.bf16.msra.mxu0 %v2193_v34  ;;  %1857 = vmatprep.subr.bf16.mxu1 %v2198_v35 }
  0xbd   : > { %1479 = vmatprep.subr.bf16.mxu0 %v2198_v35 }
  0xbf   : > { %1873 = vmatpush1.bf16.msra.mxu1 %v2196_v36 }
  0xc0   : > { %1480 = vmatpush1.bf16.msra.mxu0 %v2196_v36  ;;  %1858 = vmatprep.subr.bf16.mxu1 %v2201_v37 }
  0xc1   : > { %1481 = vmatprep.subr.bf16.mxu0 %v2201_v37  ;;  %v1577_v37 = vld [vmem:[%s2333_s21 + $0x8] sm:$0xff] }
  0xc3   : > { %1874 = vmatpush1.bf16.msra.mxu1 %v2199_v38 }
  0xc4   : > { %1482 = vmatpush1.bf16.msra.mxu0 %v2199_v38  ;;  %1859 = vmatprep.subr.bf16.mxu1 %v2204_v39 }
  0xc5   : > { %1483 = vmatprep.subr.bf16.mxu0 %v2204_v39 }
  0xc7   : > { %1875 = vmatpush1.bf16.msra.mxu1 %v2202_v40 }
  0xc8   : > { %1484 = vmatpush1.bf16.msra.mxu0 %v2202_v40  ;;  %1860 = vmatprep.subr.bf16.mxu1 %v2207_v41 }
  0xc9   : > { %1485 = vmatprep.subr.bf16.mxu0 %v2207_v41 }
  0xcb   : > { %1876 = vmatpush1.bf16.msra.mxu1 %v2205_v42 }
  0xcc   : > { %1486 = vmatpush1.bf16.msra.mxu0 %v2205_v42  ;;  %1861 = vmatprep.subr.bf16.mxu1 %v2210_v43 }
  0xcd   : > { %1487 = vmatprep.subr.bf16.mxu0 %v2210_v43 }
  0xcf   : > { %1877 = vmatpush1.bf16.msra.mxu1 %v2208_v44 }
  0xd0   : > { %1488 = vmatpush1.bf16.msra.mxu0 %v2208_v44  ;;  %1862 = vmatprep.subr.bf16.mxu1 %v2213_v45 }
  0xd1   : > { %1489 = vmatprep.subr.bf16.mxu0 %v2213_v45 }
  0xd3   : > { %1878 = vmatpush1.bf16.msra.mxu1 %v2211_v46 }
  0xd4   : > { %1490 = vmatpush1.bf16.msra.mxu0 %v2211_v46  ;;  %1863 = vmatprep.subr.bf16.mxu1 %v2216_v47 }
  0xd5   : > { %1491 = vmatprep.subr.bf16.mxu0 %v2216_v47 }
  0xd7   : > { %1879 = vmatpush1.bf16.msra.mxu1 %v2214_v48 }
  0xd8   : > { %1492 = vmatpush1.bf16.msra.mxu0 %v2214_v48  ;;  %1864 = vmatprep.subr.bf16.mxu1 %v2219_v49 }
  0xd9   : > { %1493 = vmatprep.subr.bf16.mxu0 %v2219_v49 }
  0xdb   : > { %1880 = vmatpush1.bf16.msra.mxu1 %v2217_v50 }
  0xdc   : > { %1494 = vmatpush1.bf16.msra.mxu0 %v2217_v50 }
  0xde   : > { %1506 = vmatmul.mubr.bf16.vlgmr.msra.gmra.mrb[8].mxu1 %v2223_v52 }
  0xdf   : > { %1496 = vmatmul.mubr.bf16.vlgmr.msra.gmra.mrb[0].mxu0 %v2220_v51 }
 0x171   : > { %v1338_v53 = vpop.f32.mrb[0].mxu1 }
 0x172   : > { %v1340_v54 = vpop.f32.mrb[1].mxu1 }
 0x173   : > { %v1342_v55 = vpop.f32.mrb[2].mxu1 }
 0x174   : > { %v1344_v56 = vpop.f32.mrb[3].mxu1 }
 0x179   : > { %v1348_v57 = vpop.f32.mrb[4].mxu1 }
 0x17a   : > { %v1454_v58 = vpop.f32.mrb[4].mxu0  ;;  %v1350_v60 = vpop.f32.mrb[5].mxu1 }
 0x17b   : > { %v1885_v59 = vadd.f32 %v1454_v58, %v1348_v57  ;;  %v1456_v61 = vpop.f32.mrb[5].mxu0  ;;  %v1352_v63 = vpop.f32.mrb[6].mxu1 }
 0x17c   : > { %v1887_v62 = vadd.f32 %v1456_v61, %v1350_v60  ;;  %v1458_v0 = vpop.f32.mrb[6].mxu0  ;;  %v1354_v2 = vpop.f32.mrb[7].mxu1 }
 0x17d   : > { %v1889_v1 = vadd.f32 %v1458_v0, %v1352_v63  ;;  %v1460_v3 = vpop.f32.mrb[7].mxu0  ;;  %v1576_v0 = vld [vmem:[%s2333_s21] sm:$0xff] }
 0x17e   : > { %v1891_v4 = vadd.f32 %v1460_v3, %v1354_v2 }
 0x1b1   : > { %v1507_v6 = vpop.f32.mrb[8].mxu1 }
 0x1b2   : > { %v1497_v5 = vpop.f32.mrb[0].mxu0  ;;  %v1886_v8 = vadd.f32 %v1885_v59, %v1507_v6  ;;  %v1509_v10 = vpop.f32.mrb[9].mxu1 }
 0x1b3   : > { %v1881_v7 = vadd.f32 %v1497_v5, %v1338_v53  ;;  %v1499_v9 = vpop.f32.mrb[1].mxu0  ;;  %v1888_v12 = vadd.f32 %v1887_v62, %v1509_v10  ;;  %v1511_v14 = vpop.f32.mrb[10].mxu1 }
 0x1b4   : > { %v1882_v11 = vadd.f32 %v1499_v9, %v1340_v54  ;;  %v1501_v13 = vpop.f32.mrb[2].mxu0  ;;  %v1524_v16 = vmul.f32 %v1886_v8, %v1886_v8  ;;  %v1890_v18 = vadd.f32 %v1889_v1, %v1511_v14  ;;  %v1513_v20 = vpop.f32.mrb[11].mxu1 }
 0x1b5   : > { %v1516_v15 = vmul.f32 %v1881_v7, %v1881_v7  ;;  %v1883_v17 = vadd.f32 %v1501_v13, %v1342_v55  ;;  %v1503_v19 = vpop.f32.mrb[3].mxu0  ;;  %v1526_v22 = vmul.f32 %v1888_v12, %v1888_v12  ;;  %v1892_v24 = vadd.f32 %v1891_v4, %v1513_v20 }
 0x1b6   : > { %v1518_v21 = vmul.f32 %v1882_v11, %v1882_v11  ;;  %v1884_v23 = vadd.f32 %v1503_v19, %v1344_v56  ;;  %v1525_v26 = vmul.f32 %v1890_v18, %v1890_v18 }
 0x1b7   : > { %v1517_v25 = vmul.f32 %v1883_v17, %v1883_v17  ;;  %v1528_v28 = vadd.f32 %v1526_v22, %v1524_v16  ;;  %v1527_v30 = vmul.f32 %v1892_v24, %v1892_v24 }
 0x1b8   : > { %v1520_v27 = vadd.f32 %v1518_v21, %v1516_v15  ;;  %v1519_v29 = vmul.f32 %v1884_v23, %v1884_v23  ;;  %v1578_v15 = vld [vmem:[%s2333_s21 + $0x10] sm:$0xff] }
 0x1b9   : > { %v1530_v32 = vmax.f32 %v1528_v28, 1e-07  ;;  %v1529_v34 = vadd.f32 %v1527_v30, %v1525_v26 }
 0x1ba   : > { %v1522_v31 = vmax.f32 %v1520_v27, 1e-07  ;;  %v1521_v33 = vadd.f32 %v1519_v29, %v1517_v25 }
 0x1bb   : > { %v1531_v36 = vmax.f32 %v1529_v34, 1e-07  ;;  %vm1548_vm2 = vcmp.eq.f32.partialorder %v1530_v32, inf  ;;  %v1551_v46 = vand.u32 2147483648, %v1530_v32  ;;  %vm1550_vm3 = vcmp.eq.f32.partialorder %v1530_v32, 0.0 }
 0x1bc   : > { %2226 = vrsqrt.f32 %v1522_v31  ;;  %v1523_v35 = vmax.f32 %v1521_v33, 1e-07  ;;  %vm1534_vm0 = vcmp.eq.f32.partialorder %v1522_v31, inf  ;;  %v1537_v43 = vand.u32 2147483648, %v1522_v31 }
 0x1bd   : > { %2228 = vrsqrt.f32 %v1530_v32  ;;  %v1580_v38 = vadd.f32 %v1531_v36, %v1530_v32  ;;  %vm1536_vm1 = vcmp.eq.f32.partialorder %v1522_v31, 0.0  ;;  %vm1555_vm6 = vcmp.eq.f32.partialorder %v1531_v36, inf }
 0x1be   : > { %2230 = vrsqrt.f32 %v1523_v35  ;;  %vm1541_vm4 = vcmp.eq.f32.partialorder %v1523_v35, inf  ;;  %v1544_v54 = vand.u32 2147483648, %v1523_v35  ;;  %vm1543_vm5 = vcmp.eq.f32.partialorder %v1523_v35, 0.0 }
 0x1bf   : > { %2232 = vrsqrt.f32 %v1531_v36  ;;  %v1583_v39 = vadd.f32 %v1580_v38, %v1577_v37  ;;  %v1558_v57 = vand.u32 2147483648, %v1531_v36  ;;  %vm1557_vm7 = vcmp.eq.f32.partialorder %v1531_v36, 0.0 }
 0x1c1   : > { %1586 = vst [vmem:[%s2333_s21 + $0x8] sm:$0xff] %v1583_v39 }
 0x1c6   : > { %v2227_v40 = vpop.eup %2226 }
 0x1c7   : > { %v2229_v41 = vpop.eup %2228  ;;  %v1533_v42 = vmul.f32 %v2227_v40, %v1522_v31 }
 0x1c8   : > { %v1547_v44 = vmul.f32 %v2229_v41, %v1530_v32  ;;  %v2231_v47 = vpop.eup %2230 }
 0x1c9   : > { %v1535_v45 = vsel %vm1534_vm0, %v1522_v31, %v1533_v42  ;;  %v2233_v50 = vpop.eup %2232  ;;  %v1540_v52 = vmul.f32 %v2231_v47, %v1523_v35 }
 0x1ca   : > { %v1538_v48 = vsel %vm1536_vm1, %v1537_v43, %v1535_v45  ;;  %v1549_v49 = vsel %vm1548_vm2, %v1530_v32, %v1547_v44  ;;  %v1554_v55 = vmul.f32 %v2233_v50, %v1531_v36 }
 0x1cb   : > { %2234 = vlog2.f32 %v1538_v48  ;;  %v1552_v51 = vsel %vm1550_vm3, %v1551_v46, %v1549_v49  ;;  %v1542_v56 = vsel %vm1541_vm4, %v1523_v35, %v1540_v52 }
 0x1cc   : > { %v1560_v53 = vsub.f32 %v1552_v51, %v1538_v48  ;;  %2236 = vlog2.f32 %v1552_v51  ;;  %v1545_v58 = vsel %vm1543_vm5, %v1544_v54, %v1542_v56  ;;  %v1556_v59 = vsel %vm1555_vm6, %v1531_v36, %v1554_v55 }
 0x1cd   : > { %2238 = vlog2.f32 %v1545_v58  ;;  %v1559_v60 = vsel %vm1557_vm7, %v1558_v57, %v1556_v59 }
 0x1ce   : > { %v1561_v61 = vsub.f32 %v1559_v60, %v1545_v58  ;;  %2240 = vlog2.f32 %v1559_v60  ;;  %v1562_v62 = vmul.f32 %v1560_v53, %v1560_v53 }
 0x1d0   : > { %v1563_v63 = vmul.f32 %v1561_v61, %v1561_v61 }
 0x1d2   : > { %v1579_v1 = vadd.f32 %v1563_v63, %v1562_v62 }
 0x1d4   : > { %v1582_v5 = vadd.f32 %v1579_v1, %v1576_v0 }
 0x1d5   : > { %v2235_v2 = vpop.eup %2234 }
 0x1d6   : > { %v2237_v3 = vpop.eup %2236  ;;  %v1569_v4 = vmul.f32 0.6931472, %v2235_v2  ;;  %1585 = vst [vmem:[%s2333_s21] sm:$0xff] %v1582_v5 }
 0x1d7   : > { %v1565_v6 = vmul.f32 0.6931472, %v2237_v3  ;;  %v2239_v7 = vpop.eup %2238 }
 0x1d8   : > { %v2241_v9 = vpop.eup %2240  ;;  %v1571_v10 = vmul.f32 0.6931472, %v2239_v7 }
 0x1d9   : > { %v1572_v8 = vsub.f32 %v1565_v6, %v1569_v4  ;;  %v1567_v11 = vmul.f32 0.6931472, %v2241_v9 }
 0x1db   : > { %v1573_v12 = vsub.f32 %v1567_v11, %v1571_v10  ;;  %v1574_v13 = vand.u32 2147483647, %v1572_v8 }
 0x1dd   : > { %v1575_v14 = vand.u32 2147483647, %v1573_v12 }
 0x1df   : > { %v1581_v16 = vadd.f32 %v1575_v14, %v1574_v13 }
 0x1e1   : > { %v1584_v17 = vadd.f32 %v1581_v16, %v1578_v15 }
 0x1e3   : > { %1587 = vst [vmem:[%s2333_s21 + $0x10] sm:$0xff] %v1584_v17 }
 0x1e4 PF: > { %s12_s13 = sadd.s32 1, %s2280_s13   ;;  %s2554_s9 = smov %s2272_s11 }
 0x1e5   : > { %p9_p8 = scmp.ge.s32.totalorder %s12_s13, 20   ;;  %s2555_s10 = smov %s2276_s12 }
 0x1e6   : > { %s2556_s11 = smov %s2559_s14  ;;  %s2557_s12 = smov %s2563_s15 }
 0x1e7   :  { %11 = sbr.rel (!%p9_p8) target bundleno = 3 (0x3), region = 63 }

// kernel: l1_mrstft_loss.5
= control target key start
LH: loop header
LB: loop body
LE: loop exit
PB: predicated region body
PF: predicated region fallthrough
CT: control target
= control target key end

     0   :  { %s1523_s9 = smov 0   ;;  %s1525_s10 = smov 0   ;;  %s1699_s0 = inlined_call_operand.vmem [shape: bf16[96,640], index: 0, kind: input, shape index: {}]   ;;  %s1700_s1 = inlined_call_operand.vmem [shape: bf16[5,640,256], index: 1, kind: input, shape index: {}]   ;;  %s1701_s2 = inlined_call_operand.vmem [shape: f32[2,8,384], index: 2, kind: output, shape index: {}]  }
   0x1   :  { %s1527_s11 = smov 0   ;;  %s1529_s12 = smov 0  }
   0x2   :  { %s1531_s13 = smov 0  }
   0x3 LB: > { %s21_s14 = sadd.s32 1, %s1496_s11  ;;  %s24_s15 = sadd.s32 1, %s1500_s12  ;;  %s1504_s13 = sphi %s1531_s13, %s12_s13   ;;  %s1500_s12 = sphi %s1529_s12, %s1705_s12   ;;  %s1496_s11 = sphi %s1527_s11, %s1704_s11   ;;  %s1492_s10 = sphi %s1525_s10, %s1703_s10   ;;  %s1488_s9 = sphi %s1523_s9, %s1702_s9  }
   0x4   : > { %p22_p0 = scmp.ge.s32.totalorder %s21_s14, 5  ;;  %p1114_p1 = scmp.ge.s32.totalorder %s1504_s13, 1 }
   0x5   : > { %p126_p2 = scmp.lt.s32.totalorder %s1504_s13, 11 }
   0x6   : > { %s1707_s14 = smov (%p22_p0, %s21_s14), 0  ;;  %s1709_s15 = smov (!%p22_p0, %s24_s15), %s1500_s12 }
   0x7   : > { %p127_p3 = pnand %p1114_p1, %p126_p2  ;;  %p26_p4 = scmp.ge.s32.totalorder %s1709_s15, 2 }
   0x8   : > { %s149_s16 = smul.u32 (!%p127_p3), 6, %s1492_s10  ;;  %p156_p5 = scmp.lt.s32.totalorder (!%p127_p3), %s1492_s10, 1 }
   0x9   : > { %s1711_s15 = smov (%p26_p4, %s1709_s15), 0  ;;  %130 = sbr.rel (%p127_p3) target bundleno = 394 (0x18a), region = 28 }
   0xa   : > { %p150_p6 = scmp.lt.s32.totalorder (!%p127_p3), %s149_s16, 11  ;;  %p1117_p7 = scmp.ne.s32.totalorder (!%p127_p3), %s1488_s9, 0 }
  0x10   : > { %s1713_s10 = smov (!%p156_p5, %s1492_s10), 1  ;;  %s1715_s16 = smov (!%p150_p6, %s149_s16), 11 }
  0x11   : > { %s1258_s17 = smul.u32 24, %s1713_s10  ;;  %v1506_v0 = vmov (!%p1117_p7), 0.0  }
  0x12   : > { %s1257_s18 = smul.u32 20, %s1715_s16 }
  0x13   : > { %s1558_s21 = scalar_lea.vmem %s1701_s2, %s1258_s17  ;;  %165 = sbr.rel (%p1117_p7) target bundleno = 26 (0x1a), region = 32 }
  0x14   : > { %s1563_s24 = scalar_lea.vmem %s1699_s0, %s1257_s18  ;;  %166 = vst [vmem:[%s1558_s21] sm:$0xff] (!%p1117_p7), %v1506_v0  ;;  %167 = vst [vmem:[%s1558_s21 + $0x8] sm:$0xff] (!%p1117_p7), %v1506_v0 }
  0x15   : > { %168 = vst [vmem:[%s1558_s21 + $0x10] sm:$0xff] (!%p1117_p7), %v1506_v0 }
  0x1a PF: > { %s1216_s25 = smul.u32 640, %s1488_s9  ;;  %v1399_v1 = vld [vmem:[%s1563_s24 + $0x4] ss:$20 sps:$4 sm:$0xff]   ;;  %v1402_v2 = vld [vmem:[%s1563_s24 + $0xc] ss:$20 sps:$4 sm:$0xff]  }
  0x1b   : > { %780 = vmatprep.mubr.bf16.mxu1 %v1399_v1  ;;  %843 = vmatprep.mubr.bf16.mxu0 %v1402_v2 }
  0x1c   : > { %s1574_s28 = scalar_lea.vmem %s1700_s1, %s1216_s25 }
  0x1d   : > { %v1301_v3 = vld [vmem:[%s1574_s28 + $0x4] ss:$8 sps:$4 sm:$0xff]   ;;  %v1305_v5 = vld [vmem:[%s1574_s28] ss:$8 sps:$4 sm:$0xff]   ;;  %v1307_v7 = vld [vmem:[%s1574_s28 + $0x14] ss:$8 sps:$4 sm:$0xff]  }
  0x1e   : > { %v1303_v4 = vld [vmem:[%s1574_s28 + $0x104] ss:$8 sps:$4 sm:$0xff]   ;;  %748 = vmatprep.subr.bf16.mxu1 %v1301_v3  ;;  %v1306_v6 = vld [vmem:[%s1574_s28 + $0x100] ss:$8 sps:$4 sm:$0xff]   ;;  %v1309_v8 = vld [vmem:[%s1574_s28 + $0x114] ss:$8 sps:$4 sm:$0xff]  }
  0x1f   : > { %811 = vmatprep.subr.bf16.mxu0 %v1303_v4  ;;  %749 = vmatpush1.bf16.msra.mxu1 %v1305_v5  ;;  %v1311_v9 = vld [vmem:[%s1574_s28 + $0x10] ss:$8 sps:$4 sm:$0xff]   ;;  %v1313_v11 = vld [vmem:[%s1574_s28 + $0x24] ss:$8 sps:$4 sm:$0xff]   ;;  %v1317_v13 = vld [vmem:[%s1574_s28 + $0x20] ss:$8 sps:$4 sm:$0xff]  }
  0x20   : > { %812 = vmatpush1.bf16.msra.mxu0 %v1306_v6  ;;  %750 = vmatprep.subr.bf16.mxu1 %v1307_v7  ;;  %v1312_v10 = vld [vmem:[%s1574_s28 + $0x110] ss:$8 sps:$4 sm:$0xff]   ;;  %v1315_v12 = vld [vmem:[%s1574_s28 + $0x124] ss:$8 sps:$4 sm:$0xff]   ;;  %v1318_v14 = vld [vmem:[%s1574_s28 + $0x120] ss:$8 sps:$4 sm:$0xff]  }
  0x21   : > { %813 = vmatprep.subr.bf16.mxu0 %v1309_v8  ;;  %v1319_v15 = vld [vmem:[%s1574_s28 + $0x34] ss:$8 sps:$4 sm:$0xff]   ;;  %v1323_v17 = vld [vmem:[%s1574_s28 + $0x30] ss:$8 sps:$4 sm:$0xff]   ;;  %v1325_v19 = vld [vmem:[%s1574_s28 + $0x44] ss:$8 sps:$4 sm:$0xff]  }
  0x22   : > { %v1321_v16 = vld [vmem:[%s1574_s28 + $0x134] ss:$8 sps:$4 sm:$0xff]   ;;  %v1324_v18 = vld [vmem:[%s1574_s28 + $0x130] ss:$8 sps:$4 sm:$0xff]   ;;  %v1327_v20 = vld [vmem:[%s1574_s28 + $0x144] ss:$8 sps:$4 sm:$0xff]  }
  0x23   : > { %751 = vmatpush1.bf16.msra.mxu1 %v1311_v9  ;;  %v1329_v21 = vld [vmem:[%s1574_s28 + $0x40] ss:$8 sps:$4 sm:$0xff]   ;;  %v1331_v23 = vld [vmem:[%s1574_s28 + $0x54] ss:$8 sps:$4 sm:$0xff]   ;;  %v1335_v25 = vld [vmem:[%s1574_s28 + $0x50] ss:$8 sps:$4 sm:$0xff]  }
  0x24   : > { %814 = vmatpush1.bf16.msra.mxu0 %v1312_v10  ;;  %752 = vmatprep.subr.bf16.mxu1 %v1313_v11  ;;  %v1330_v22 = vld [vmem:[%s1574_s28 + $0x140] ss:$8 sps:$4 sm:$0xff]   ;;  %v1333_v24 = vld [vmem:[%s1574_s28 + $0x154] ss:$8 sps:$4 sm:$0xff]   ;;  %v1336_v26 = vld [vmem:[%s1574_s28 + $0x150] ss:$8 sps:$4 sm:$0xff]  }
  0x25   : > { %815 = vmatprep.subr.bf16.mxu0 %v1315_v12  ;;  %v1337_v27 = vld [vmem:[%s1574_s28 + $0x64] ss:$8 sps:$4 sm:$0xff]   ;;  %v1341_v29 = vld [vmem:[%s1574_s28 + $0x60] ss:$8 sps:$4 sm:$0xff]   ;;  %v1343_v31 = vld [vmem:[%s1574_s28 + $0x74] ss:$8 sps:$4 sm:$0xff]  }
  0x26   : > { %v1339_v28 = vld [vmem:[%s1574_s28 + $0x164] ss:$8 sps:$4 sm:$0xff]   ;;  %v1342_v30 = vld [vmem:[%s1574_s28 + $0x160] ss:$8 sps:$4 sm:$0xff]   ;;  %v1345_v32 = vld [vmem:[%s1574_s28 + $0x174] ss:$8 sps:$4 sm:$0xff]  }
  0x27   : > { %753 = vmatpush1.bf16.msra.mxu1 %v1317_v13  ;;  %v1347_v33 = vld [vmem:[%s1574_s28 + $0x70] ss:$8 sps:$4 sm:$0xff]   ;;  %v1349_v35 = vld [vmem:[%s1574_s28 + $0x84] ss:$8 sps:$4 sm:$0xff]   ;;  %v1353_v37 = vld [vmem:[%s1574_s28 + $0x80] ss:$8 sps:$4 sm:$0xff]  }
  0x28   : > { %816 = vmatpush1.bf16.msra.mxu0 %v1318_v14  ;;  %754 = vmatprep.subr.bf16.mxu1 %v1319_v15  ;;  %v1348_v34 = vld [vmem:[%s1574_s28 + $0x170] ss:$8 sps:$4 sm:$0xff]   ;;  %v1351_v36 = vld [vmem:[%s1574_s28 + $0x184] ss:$8 sps:$4 sm:$0xff]   ;;  %v1354_v38 = vld [vmem:[%s1574_s28 + $0x180] ss:$8 sps:$4 sm:$0xff]  }
  0x29   : > { %817 = vmatprep.subr.bf16.mxu0 %v1321_v16  ;;  %v1355_v39 = vld [vmem:[%s1574_s28 + $0x94] ss:$8 sps:$4 sm:$0xff]   ;;  %v1359_v41 = vld [vmem:[%s1574_s28 + $0x90] ss:$8 sps:$4 sm:$0xff]   ;;  %v1361_v43 = vld [vmem:[%s1574_s28 + $0xa4] ss:$8 sps:$4 sm:$0xff]  }
  0x2a   : > { %v1357_v40 = vld [vmem:[%s1574_s28 + $0x194] ss:$8 sps:$4 sm:$0xff]   ;;  %v1360_v42 = vld [vmem:[%s1574_s28 + $0x190] ss:$8 sps:$4 sm:$0xff]   ;;  %v1363_v44 = vld [vmem:[%s1574_s28 + $0x1a4] ss:$8 sps:$4 sm:$0xff]  }
  0x2b   : > { %755 = vmatpush1.bf16.msra.mxu1 %v1323_v17  ;;  %v1365_v45 = vld [vmem:[%s1574_s28 + $0xa0] ss:$8 sps:$4 sm:$0xff]   ;;  %v1367_v47 = vld [vmem:[%s1574_s28 + $0xb4] ss:$8 sps:$4 sm:$0xff]   ;;  %v1371_v49 = vld [vmem:[%s1574_s28 + $0xb0] ss:$8 sps:$4 sm:$0xff]  }
  0x2c   : > { %818 = vmatpush1.bf16.msra.mxu0 %v1324_v18  ;;  %756 = vmatprep.subr.bf16.mxu1 %v1325_v19  ;;  %v1366_v46 = vld [vmem:[%s1574_s28 + $0x1a0] ss:$8 sps:$4 sm:$0xff]   ;;  %v1369_v48 = vld [vmem:[%s1574_s28 + $0x1b4] ss:$8 sps:$4 sm:$0xff]   ;;  %v1372_v50 = vld [vmem:[%s1574_s28 + $0x1b0] ss:$8 sps:$4 sm:$0xff]  }
  0x2d   : > { %819 = vmatprep.subr.bf16.mxu0 %v1327_v20  ;;  %v1373_v51 = vld [vmem:[%s1574_s28 + $0xc4] ss:$8 sps:$4 sm:$0xff]   ;;  %v1377_v53 = vld [vmem:[%s1574_s28 + $0xc0] ss:$8 sps:$4 sm:$0xff]   ;;  %v1379_v55 = vld [vmem:[%s1574_s28 + $0xd4] ss:$8 sps:$4 sm:$0xff]  }
  0x2e   : > { %v1375_v52 = vld [vmem:[%s1574_s28 + $0x1c4] ss:$8 sps:$4 sm:$0xff]   ;;  %v1378_v54 = vld [vmem:[%s1574_s28 + $0x1c0] ss:$8 sps:$4 sm:$0xff]   ;;  %v1381_v56 = vld [vmem:[%s1574_s28 + $0x1d4] ss:$8 sps:$4 sm:$0xff]  }
  0x2f   : > { %757 = vmatpush1.bf16.msra.mxu1 %v1329_v21  ;;  %v1383_v57 = vld [vmem:[%s1574_s28 + $0xd0] ss:$8 sps:$4 sm:$0xff]   ;;  %v1385_v59 = vld [vmem:[%s1574_s28 + $0xe4] ss:$8 sps:$4 sm:$0xff]   ;;  %v1389_v61 = vld [vmem:[%s1574_s28 + $0xe0] ss:$8 sps:$4 sm:$0xff]  }
  0x30   : > { %820 = vmatpush1.bf16.msra.mxu0 %v1330_v22  ;;  %758 = vmatprep.subr.bf16.mxu1 %v1331_v23  ;;  %v1384_v58 = vld [vmem:[%s1574_s28 + $0x1d0] ss:$8 sps:$4 sm:$0xff]   ;;  %v1387_v60 = vld [vmem:[%s1574_s28 + $0x1e4] ss:$8 sps:$4 sm:$0xff]   ;;  %v1390_v62 = vld [vmem:[%s1574_s28 + $0x1e0] ss:$8 sps:$4 sm:$0xff]  }
  0x31   : > { %821 = vmatprep.subr.bf16.mxu0 %v1333_v24  ;;  %v1391_v63 = vld [vmem:[%s1574_s28 + $0xf4] ss:$8 sps:$4 sm:$0xff]   ;;  %v1395_v1 = vld [vmem:[%s1574_s28 + $0xf0] ss:$8 sps:$4 sm:$0xff]   ;;  %v1405_v3 = vld [vmem:[%s1574_s28 + $0x204] ss:$8 sps:$4 sm:$0xff]  }
  0x32   : > { %v1393_v0 = vld [vmem:[%s1574_s28 + $0x1f4] ss:$8 sps:$4 sm:$0xff]   ;;  %v1396_v2 = vld [vmem:[%s1574_s28 + $0x1f0] ss:$8 sps:$4 sm:$0xff]   ;;  %v1403_v6 = vld [vmem:[%s1574_s28 + $0x200] ss:$8 sps:$4 sm:$0xff]  }
  0x33   : > { %759 = vmatpush1.bf16.msra.mxu1 %v1335_v25  ;;  %v1397_v4 = vld [vmem:[%s1563_s24] ss:$20 sps:$4 sm:$0xff]   ;;  %v1400_v5 = vld [vmem:[%s1563_s24 + $0x8] ss:$20 sps:$4 sm:$0xff]   ;;  %v1406_v10 = vld [vmem:[%s1574_s28 + $0x210] ss:$8 sps:$4 sm:$0xff]  }
  0x34   : > { %822 = vmatpush1.bf16.msra.mxu0 %v1336_v26  ;;  %760 = vmatprep.subr.bf16.mxu1 %v1337_v27  ;;  %v1408_v7 = vld [vmem:[%s1574_s28 + $0x214] ss:$8 sps:$4 sm:$0xff]   ;;  %v1412_v8 = vld [vmem:[%s1563_s24 + $0x2c] ss:$20 sps:$4 sm:$0xff]   ;;  %v1420_v13 = vld [vmem:[%s1563_s24 + $0x30] ss:$20 sps:$4 sm:$0xff]  }
  0x35   : > { %823 = vmatprep.subr.bf16.mxu0 %v1339_v28  ;;  %v1414_v9 = vld [vmem:[%s1563_s24 + $0x34] ss:$20 sps:$4 sm:$0xff]   ;;  %v1411_v11 = vld [vmem:[%s1574_s28 + $0x224] ss:$8 sps:$4 sm:$0xff]   ;;  %v1426_v17 = vld [vmem:[%s1563_s24 + $0x5c] ss:$20 sps:$4 sm:$0xff]  }
  0x36   : > { %v1419_v12 = vld [vmem:[%s1563_s24 + $0x28] ss:$20 sps:$4 sm:$0xff]   ;;  %v1416_v18 = vld [vmem:[%s1574_s28 + $0x230] ss:$8 sps:$4 sm:$0xff]   ;;  %v1423_v19 = vld [vmem:[%s1574_s28 + $0x244] ss:$8 sps:$4 sm:$0xff]  }
  0x37   : > { %761 = vmatpush1.bf16.msra.mxu1 %v1341_v29  ;;  %v1409_v14 = vld [vmem:[%s1574_s28 + $0x220] ss:$8 sps:$4 sm:$0xff]   ;;  %v1418_v15 = vld [vmem:[%s1574_s28 + $0x234] ss:$8 sps:$4 sm:$0xff]   ;;  %v1431_v20 = vld [vmem:[%s1563_s24 + $0x50] ss:$20 sps:$4 sm:$0xff]  }
  0x38   : > { %824 = vmatpush1.bf16.msra.mxu0 %v1342_v30  ;;  %762 = vmatprep.subr.bf16.mxu1 %v1343_v31  ;;  %v1424_v16 = vld [vmem:[%s1563_s24 + $0x54] ss:$20 sps:$4 sm:$0xff]   ;;  %v1432_v21 = vld [vmem:[%s1563_s24 + $0x58] ss:$20 sps:$4 sm:$0xff]   ;;  %v1507_v26 = vmov 0  }
  0x39   : > { %825 = vmatprep.subr.bf16.mxu0 %v1345_v32  ;;  %v1421_v22 = vld [vmem:[%s1574_s28 + $0x240] ss:$8 sps:$4 sm:$0xff]   ;;  %v1430_v23 = vld [vmem:[%s1574_s28 + $0x254] ss:$8 sps:$4 sm:$0xff]   ;;  %v1428_v24 = vld [vmem:[%s1574_s28 + $0x250] ss:$8 sps:$4 sm:$0xff]  }
  0x3a   : > { %v1435_v25 = vld [vmem:[%s1574_s28 + $0x264] ss:$8 sps:$4 sm:$0xff]   ;;  %v1433_v27 = vld [vmem:[%s1574_s28 + $0x260] ss:$8 sps:$4 sm:$0xff]   ;;  %v1438_v28 = vld [vmem:[%s1574_s28 + $0x274] ss:$8 sps:$4 sm:$0xff]  }
  0x3b   : > { %763 = vmatpush1.bf16.msra.mxu1 %v1347_v33  ;;  %v1436_v29 = vld [vmem:[%s1574_s28 + $0x270] ss:$8 sps:$4 sm:$0xff]   ;;  %v1441_v32 = vld [vmem:[%s1563_s24 + $0x60] ss:$20 sps:$4 sm:$0xff]  }
  0x3c   : > { %826 = vmatpush1.bf16.msra.mxu0 %v1348_v34  ;;  %764 = vmatprep.subr.bf16.mxu1 %v1349_v35  ;;  %v1439_v30 = vld [vmem:[%s1563_s24 + $0x10] ss:$20 sps:$4 sm:$0xff]   ;;  %v1440_v31 = vld [vmem:[%s1563_s24 + $0x38] ss:$20 sps:$4 sm:$0xff]  }
  0x3d   : > { %827 = vmatprep.subr.bf16.mxu0 %v1351_v36 }
  0x3f   : > { %765 = vmatpush1.bf16.msra.mxu1 %v1353_v37 }
  0x40   : > { %828 = vmatpush1.bf16.msra.mxu0 %v1354_v38  ;;  %766 = vmatprep.subr.bf16.mxu1 %v1355_v39 }
  0x41   : > { %829 = vmatprep.subr.bf16.mxu0 %v1357_v40 }
  0x43   : > { %767 = vmatpush1.bf16.msra.mxu1 %v1359_v41 }
  0x44   : > { %830 = vmatpush1.bf16.msra.mxu0 %v1360_v42  ;;  %768 = vmatprep.subr.bf16.mxu1 %v1361_v43 }
  0x45   : > { %831 = vmatprep.subr.bf16.mxu0 %v1363_v44 }
  0x47   : > { %769 = vmatpush1.bf16.msra.mxu1 %v1365_v45 }
  0x48   : > { %832 = vmatpush1.bf16.msra.mxu0 %v1366_v46  ;;  %770 = vmatprep.subr.bf16.mxu1 %v1367_v47 }
  0x49   : > { %833 = vmatprep.subr.bf16.mxu0 %v1369_v48 }
  0x4b   : > { %771 = vmatpush1.bf16.msra.mxu1 %v1371_v49 }
  0x4c   : > { %834 = vmatpush1.bf16.msra.mxu0 %v1372_v50  ;;  %772 = vmatprep.subr.bf16.mxu1 %v1373_v51 }
  0x4d   : > { %835 = vmatprep.subr.bf16.mxu0 %v1375_v52 }
  0x4f   : > { %773 = vmatpush1.bf16.msra.mxu1 %v1377_v53 }
  0x50   : > { %836 = vmatpush1.bf16.msra.mxu0 %v1378_v54  ;;  %774 = vmatprep.subr.bf16.mxu1 %v1379_v55 }
  0x51   : > { %837 = vmatprep.subr.bf16.mxu0 %v1381_v56 }
  0x53   : > { %775 = vmatpush1.bf16.msra.mxu1 %v1383_v57 }
  0x54   : > { %838 = vmatpush1.bf16.msra.mxu0 %v1384_v58  ;;  %776 = vmatprep.subr.bf16.mxu1 %v1385_v59 }
  0x55   : > { %839 = vmatprep.subr.bf16.mxu0 %v1387_v60 }
  0x57   : > { %777 = vmatpush1.bf16.msra.mxu1 %v1389_v61 }
  0x58   : > { %840 = vmatpush1.bf16.msra.mxu0 %v1390_v62  ;;  %778 = vmatprep.subr.bf16.mxu1 %v1391_v63 }
  0x59   : > { %841 = vmatprep.subr.bf16.mxu0 %v1393_v0 }
  0x5b   : > { %779 = vmatpush1.bf16.msra.mxu1 %v1395_v1 }
  0x5c   : > { %842 = vmatpush1.bf16.msra.mxu0 %v1396_v2  ;;  %1217 = vmatprep.subr.bf16.mxu1 %v1405_v3 }
  0x5d   : > { %874 = vmatprep.subr.bf16.mxu0 %v1405_v3 }
  0x5e   : > { %781 = vmatmul.mubr.bf16.vlgmr.msra.gmra.mrb[0].mxu1 %v1397_v4 }
  0x5f   : > { %844 = vmatmul.mubr.bf16.vlgmr.msra.gmra.mrb[0].mxu0 %v1400_v5  ;;  %1225 = vmatpush1.bf16.msra.mxu1 %v1403_v6 }
  0x60   : > { %875 = vmatpush1.bf16.msra.mxu0 %v1403_v6  ;;  %1218 = vmatprep.subr.bf16.mxu1 %v1408_v7 }
  0x61   : > { %876 = vmatprep.subr.bf16.mxu0 %v1408_v7  ;;  %790 = vmatprep.mubr.bf16.mxu1 %v1412_v8 }
  0x62   : > { %853 = vmatprep.mubr.bf16.mxu0 %v1414_v9 }
  0x63   : > { %1226 = vmatpush1.bf16.msra.mxu1 %v1406_v10 }
  0x64   : > { %877 = vmatpush1.bf16.msra.mxu0 %v1406_v10  ;;  %1219 = vmatprep.subr.bf16.mxu1 %v1411_v11 }
  0x65   : > { %878 = vmatprep.subr.bf16.mxu0 %v1411_v11 }
  0x66   : > { %791 = vmatmul.mubr.bf16.gmra.mrb[4].mxu1 %v1419_v12 }
  0x67   : > { %854 = vmatmul.mubr.bf16.gmra.mrb[4].mxu0 %v1420_v13  ;;  %1227 = vmatpush1.bf16.msra.mxu1 %v1409_v14 }
  0x68   : > { %879 = vmatpush1.bf16.msra.mxu0 %v1409_v14  ;;  %1220 = vmatprep.subr.bf16.mxu1 %v1418_v15 }
  0x69   : > { %880 = vmatprep.subr.bf16.mxu0 %v1418_v15  ;;  %800 = vmatprep.mubr.bf16.mxu1 %v1424_v16 }
  0x6a   : > { %863 = vmatprep.mubr.bf16.mxu0 %v1426_v17 }
  0x6b   : > { %1228 = vmatpush1.bf16.msra.mxu1 %v1416_v18 }
  0x6c   : > { %881 = vmatpush1.bf16.msra.mxu0 %v1416_v18  ;;  %1221 = vmatprep.subr.bf16.mxu1 %v1423_v19 }
  0x6d   : > { %882 = vmatprep.subr.bf16.mxu0 %v1423_v19 }
  0x6e   : > { %801 = vmatmul.mubr.bf16.gmra.mrb[8].mxu1 %v1431_v20 }
  0x6f   : > { %864 = vmatmul.mubr.bf16.gmra.mrb[8].mxu0 %v1432_v21  ;;  %1229 = vmatpush1.bf16.msra.mxu1 %v1421_v22 }
  0x70   : > { %883 = vmatpush1.bf16.msra.mxu0 %v1421_v22  ;;  %1222 = vmatprep.subr.bf16.mxu1 %v1430_v23 }
  0x71   : > { %884 = vmatprep.subr.bf16.mxu0 %v1430_v23  ;;  %906 = vmatprep.mubr.bf16.mxu0 %v1507_v26 }
  0x72   : > { %916 = vmatprep.mubr.bf16.mxu1 %v1507_v26 }
  0x73   : > { %1230 = vmatpush1.bf16.msra.mxu1 %v1428_v24 }
  0x74   : > { %885 = vmatpush1.bf16.msra.mxu0 %v1428_v24  ;;  %1223 = vmatprep.subr.bf16.mxu1 %v1435_v25 }
  0x75   : > { %886 = vmatprep.subr.bf16.mxu0 %v1435_v25 }
  0x77   : > { %1231 = vmatpush1.bf16.msra.mxu1 %v1433_v27 }
  0x78   : > { %887 = vmatpush1.bf16.msra.mxu0 %v1433_v27  ;;  %1224 = vmatprep.subr.bf16.mxu1 %v1438_v28 }
  0x79   : > { %888 = vmatprep.subr.bf16.mxu0 %v1438_v28 }
  0x7b   : > { %1232 = vmatpush1.bf16.msra.mxu1 %v1436_v29 }
  0x7c   : > { %889 = vmatpush1.bf16.msra.mxu0 %v1436_v29 }
  0x7e   : > { %917 = vmatmul.mubr.bf16.vlgmr.msra.gmra.mrb[12].mxu1 %v1440_v31 }
  0x7f   : > { %907 = vmatmul.mubr.bf16.vlgmr.msra.gmra.mrb[0].mxu0 %v1439_v30  ;;  %926 = vmatprep.mubr.bf16.mxu1 %v1507_v26 }
  0x86   : > { %927 = vmatmul.mubr.bf16.gmra.mrb[16].mxu1 %v1441_v32 }
 0x131   : > { %v782_v33 = vpop.f32.mrb[0].mxu1 }
 0x132   : > { %v784_v34 = vpop.f32.mrb[1].mxu1 }
 0x133   : > { %v786_v35 = vpop.f32.mrb[2].mxu1 }
 0x134   : > { %v788_v36 = vpop.f32.mrb[3].mxu1 }
 0x139   : > { %v792_v37 = vpop.f32.mrb[4].mxu1 }
 0x13a   : > { %v855_v38 = vpop.f32.mrb[4].mxu0  ;;  %v794_v40 = vpop.f32.mrb[5].mxu1 }
 0x13b   : > { %v856_v39 = vadd.f32 %v855_v38, %v792_v37  ;;  %v857_v41 = vpop.f32.mrb[5].mxu0  ;;  %v796_v43 = vpop.f32.mrb[6].mxu1 }
 0x13c   : > { %v858_v42 = vadd.f32 %v857_v41, %v794_v40  ;;  %v859_v44 = vpop.f32.mrb[6].mxu0  ;;  %v798_v46 = vpop.f32.mrb[7].mxu1 }
 0x13d   : > { %v860_v45 = vadd.f32 %v859_v44, %v796_v43  ;;  %v861_v47 = vpop.f32.mrb[7].mxu0 }
 0x13e   : > { %v862_v48 = vadd.f32 %v861_v47, %v798_v46 }
 0x141   : > { %v802_v49 = vpop.f32.mrb[8].mxu1 }
 0x142   : > { %v865_v50 = vpop.f32.mrb[8].mxu0  ;;  %v804_v52 = vpop.f32.mrb[9].mxu1 }
 0x143   : > { %v866_v51 = vadd.f32 %v865_v50, %v802_v49  ;;  %v867_v53 = vpop.f32.mrb[9].mxu0  ;;  %v806_v55 = vpop.f32.mrb[10].mxu1 }
 0x144   : > { %v868_v54 = vadd.f32 %v867_v53, %v804_v52  ;;  %v869_v56 = vpop.f32.mrb[10].mxu0  ;;  %v808_v58 = vpop.f32.mrb[11].mxu1 }
 0x145   : > { %v870_v57 = vadd.f32 %v869_v56, %v806_v55  ;;  %v871_v59 = vpop.f32.mrb[11].mxu0  ;;  %v1028_v55 = vld [vmem:[%s1558_s21 + $0x8] sm:$0xff] }
 0x146   : > { %v872_v60 = vadd.f32 %v871_v59, %v808_v58 }
 0x151   : > { %v918_v62 = vpop.f32.mrb[12].mxu1 }
 0x152   : > { %v908_v61 = vpop.f32.mrb[0].mxu0  ;;  %v919_v0 = vadd.f32 %v918_v62, %v856_v39  ;;  %v920_v2 = vpop.f32.mrb[13].mxu1 }
 0x153   : > { %v1233_v63 = vadd.f32 %v908_v61, %v782_v33  ;;  %v910_v1 = vpop.f32.mrb[1].mxu0  ;;  %v921_v4 = vadd.f32 %v920_v2, %v858_v42  ;;  %v922_v6 = vpop.f32.mrb[14].mxu1 }
 0x154   : > { %v1234_v3 = vadd.f32 %v910_v1, %v784_v34  ;;  %v912_v5 = vpop.f32.mrb[2].mxu0  ;;  %v939_v8 = vmul.f32 %v919_v0, %v919_v0  ;;  %v923_v10 = vadd.f32 %v922_v6, %v860_v45  ;;  %v924_v12 = vpop.f32.mrb[15].mxu1 }
 0x155   : > { %v937_v7 = vmul.f32 %v1233_v63, %v1233_v63  ;;  %v1235_v9 = vadd.f32 %v912_v5, %v786_v35  ;;  %v914_v11 = vpop.f32.mrb[3].mxu0  ;;  %v942_v14 = vmul.f32 %v921_v4, %v921_v4  ;;  %v925_v16 = vadd.f32 %v924_v12, %v862_v48 }
 0x156   : > { %v940_v13 = vmul.f32 %v1234_v3, %v1234_v3  ;;  %v1236_v15 = vadd.f32 %v914_v11, %v788_v36  ;;  %v949_v18 = vmul.f32 %v923_v10, %v923_v10 }
 0x157   : > { %v938_v17 = vmul.f32 %v1235_v9, %v1235_v9  ;;  %v945_v20 = vadd.f32 %v942_v14, %v939_v8  ;;  %v952_v22 = vmul.f32 %v925_v16, %v925_v16 }
 0x158   : > { %v943_v19 = vadd.f32 %v940_v13, %v937_v7  ;;  %v941_v21 = vmul.f32 %v1236_v15, %v1236_v15 }
 0x159   : > { %v955_v25 = vadd.f32 %v952_v22, %v949_v18  ;;  %v928_v26 = vpop.f32.mrb[16].mxu1  ;;  %v1670_v27 = vmax.f32 %v945_v20, 1e-07 }
 0x15a   : > { %v946_v23 = vmax.f32 %v943_v19, 1e-07  ;;  %v944_v24 = vadd.f32 %v941_v21, %v938_v17  ;;  %v929_v28 = vadd.f32 %v928_v26, %v866_v51  ;;  %v930_v29 = vpop.f32.mrb[17].mxu1  ;;  %v1027_v26 = vld [vmem:[%s1558_s21] sm:$0xff] }
 0x15b   : > { %v932_v30 = vpop.f32.mrb[18].mxu1  ;;  %v958_v33 = vmax.f32 %v955_v25, 1e-07  ;;  %v931_v34 = vadd.f32 %v930_v29, %v868_v54  ;;  %vm977_vm5 = vcmp.eq.f32.partialorder %v1670_v27, inf  ;;  %v980_v3 = vand.u32 2147483648, %v1670_v27 }
 0x15c   : > { %1442 = vrsqrt.f32 %v946_v23  ;;  %v934_v31 = vpop.f32.mrb[19].mxu1  ;;  %v947_v32 = vmax.f32 %v944_v24, 1e-07  ;;  %v933_v35 = vadd.f32 %v932_v30, %v870_v57  ;;  %v950_v37 = vmul.f32 %v929_v28, %v929_v28 }
 0x15d   : > { %1444 = vrsqrt.f32 %v1670_v27  ;;  %v935_v36 = vadd.f32 %v934_v31, %v872_v60  ;;  %v953_v38 = vmul.f32 %v931_v34, %v931_v34  ;;  %vm963_vm0 = vcmp.eq.f32.partialorder %v946_v23, inf }
 0x15e   : > { %1446 = vrsqrt.f32 %v947_v32  ;;  %v951_v39 = vmul.f32 %v933_v35, %v933_v35  ;;  %v966_v49 = vand.u32 2147483648, %v946_v23  ;;  %vm965_vm1 = vcmp.eq.f32.partialorder %v946_v23, 0.0 }
 0x15f   : > { %1448 = vrsqrt.f32 %v958_v33  ;;  %v954_v40 = vmul.f32 %v935_v36, %v935_v36  ;;  %v956_v41 = vadd.f32 %v953_v38, %v950_v37  ;;  %vm970_vm2 = vcmp.eq.f32.partialorder %v947_v32, inf }
 0x160   : > { %vm984_vm3 = vcmp.eq.f32.partialorder %v958_v33, inf  ;;  %v987_v59 = vand.u32 2147483648, %v958_v33  ;;  %vm986_vm4 = vcmp.eq.f32.partialorder %v958_v33, 0.0  ;;  %v973_v1 = vand.u32 2147483648, %v947_v32 }
 0x161   : > { %v957_v42 = vadd.f32 %v954_v40, %v951_v39  ;;  %v959_v44 = vmax.f32 %v956_v41, 1e-07  ;;  %vm972_vm6 = vcmp.eq.f32.partialorder %v947_v32, 0.0  ;;  %vm979_vm7 = vcmp.eq.f32.partialorder %v1670_v27, 0.0 }
 0x163   : > { %v960_v45 = vmax.f32 %v957_v42, 1e-07  ;;  %1450 = vrsqrt.f32 %v959_v44  ;;  %v1032_v50 = vadd.f32 %v959_v44, %v958_v33  ;;  %vm991_vm8 = vcmp.eq.f32.partialorder %v959_v44, inf }
 0x164   : > { %vm993_vm9 = vcmp.eq.f32.partialorder %v959_v44, 0.0  ;;  %v994_v9 = vand.u32 2147483648, %v959_v44 }
 0x165   : > { %1452 = vrsqrt.f32 %v960_v45  ;;  %v1033_v58 = vadd.f32 %v1032_v50, %v960_v45  ;;  %vm998_vm10 = vcmp.eq.f32.partialorder %v960_v45, inf  ;;  %v1001_v12 = vand.u32 2147483648, %v960_v45 }
 0x166   : > { %v1443_v43 = vpop.eup %1442  ;;  %vm1000_vm11 = vcmp.eq.f32.partialorder %v960_v45, 0.0 }
 0x167   : > { %v962_v46 = vmul.f32 %v1443_v43, %v946_v23  ;;  %v1445_v47 = vpop.eup %1444  ;;  %v1037_v61 = vadd.f32 %v1033_v58, %v1028_v55 }
 0x168   : > { %v1447_v51 = vpop.eup %1446  ;;  %v976_v56 = vmul.f32 %v1445_v47, %v1670_v27 }
 0x169   : > { %v964_v48 = vsel %vm963_vm0, %v946_v23, %v962_v46  ;;  %v1449_v52 = vpop.eup %1448  ;;  %v969_v54 = vmul.f32 %v1447_v51, %v947_v32  ;;  %1040 = vst [vmem:[%s1558_s21 + $0x8] sm:$0xff] %v1037_v61 }
 0x16a   : > { %v967_v53 = vsel %vm965_vm1, %v966_v49, %v964_v48  ;;  %v983_v57 = vmul.f32 %v1449_v52, %v958_v33  ;;  %v978_v0 = vsel %vm977_vm5, %v1670_v27, %v976_v56 }
 0x16b   : > { %1454 = vlog2.f32 %v967_v53  ;;  %v971_v62 = vsel %vm970_vm2, %v947_v32, %v969_v54  ;;  %v981_v7 = vsel %vm979_vm7, %v980_v3, %v978_v0 }
 0x16c   : > { %v985_v60 = vsel %vm984_vm3, %v958_v33, %v983_v57  ;;  %v974_v5 = vsel %vm972_vm6, %v973_v1, %v971_v62 }
 0x16d   : > { %v988_v63 = vsel %vm986_vm4, %v987_v59, %v985_v60  ;;  %v1451_v4 = vpop.eup %1450 }
 0x16e   : > { %v1003_v2 = vsub.f32 %v988_v63, %v967_v53  ;;  %1456 = vlog2.f32 %v988_v63  ;;  %v990_v8 = vmul.f32 %v1451_v4, %v959_v44 }
 0x16f   : > { %v1453_v6 = vpop.eup %1452  ;;  %1458 = vlog2.f32 %v974_v5 }
 0x170   : > { %v997_v10 = vmul.f32 %v1453_v6, %v960_v45  ;;  %v992_v11 = vsel %vm991_vm8, %v959_v44, %v990_v8  ;;  %1460 = vlog2.f32 %v981_v7  ;;  %v1006_v19 = vmul.f32 %v1003_v2, %v1003_v2  ;;  %v1029_v44 = vld [vmem:[%s1558_s21 + $0x10] sm:$0xff] }
 0x171   : > { %v995_v13 = vsel %vm993_vm9, %v994_v9, %v992_v11 }
 0x172   : > { %v999_v14 = vsel %vm998_vm10, %v960_v45, %v997_v10  ;;  %v1004_v15 = vsub.f32 %v995_v13, %v974_v5  ;;  %1462 = vlog2.f32 %v995_v13 }
 0x173   : > { %v1002_v16 = vsel %vm1000_vm11, %v1001_v12, %v999_v14 }
 0x174   : > { %v1005_v18 = vsub.f32 %v1002_v16, %v981_v7  ;;  %1464 = vlog2.f32 %v1002_v16  ;;  %v1007_v20 = vmul.f32 %v1004_v15, %v1004_v15 }
 0x175   : > { %v1455_v17 = vpop.eup %1454 }
 0x176   : > { %v1008_v22 = vmul.f32 %v1005_v18, %v1005_v18  ;;  %v1016_v23 = vmul.f32 0.6931472, %v1455_v17  ;;  %v1030_v25 = vadd.f32 %v1007_v20, %v1006_v19 }
 0x178   : > { %v1457_v21 = vpop.eup %1456  ;;  %v1031_v28 = vadd.f32 %v1030_v25, %v1008_v22 }
 0x179   : > { %v1010_v24 = vmul.f32 0.6931472, %v1457_v21  ;;  %v1459_v29 = vpop.eup %1458 }
 0x17a   : > { %v1036_v30 = vadd.f32 %v1031_v28, %v1027_v26  ;;  %v1461_v31 = vpop.eup %1460  ;;  %v1018_v34 = vmul.f32 0.6931472, %v1459_v29 }
 0x17b   : > { %v1021_v27 = vsub.f32 %v1010_v24, %v1016_v23  ;;  %v1020_v36 = vmul.f32 0.6931472, %v1461_v31 }
 0x17c   : > { %v1463_v32 = vpop.eup %1462  ;;  %1039 = vst [vmem:[%s1558_s21] sm:$0xff] %v1036_v30 }
 0x17d   : > { %v1012_v35 = vmul.f32 0.6931472, %v1463_v32  ;;  %v1024_v40 = vand.u32 2147483647, %v1021_v27 }
 0x17e   : > { %v1465_v33 = vpop.eup %1464 }
 0x17f   : > { %v1014_v37 = vmul.f32 0.6931472, %v1465_v33  ;;  %v1022_v38 = vsub.f32 %v1012_v35, %v1018_v34 }
 0x181   : > { %v1023_v39 = vsub.f32 %v1014_v37, %v1020_v36  ;;  %v1025_v41 = vand.u32 2147483647, %v1022_v38 }
 0x183   : > { %v1026_v42 = vand.u32 2147483647, %v1023_v39  ;;  %v1034_v43 = vadd.f32 %v1025_v41, %v1024_v40 }
 0x185   : > { %v1035_v45 = vadd.f32 %v1034_v43, %v1026_v42 }
 0x187   : > { %v1038_v46 = vadd.f32 %v1035_v45, %v1029_v44 }
 0x189   : > { %1041 = vst [vmem:[%s1558_s21 + $0x10] sm:$0xff] %v1038_v46 }
 0x18a PF: > { %s12_s13 = sadd.s32 1, %s1504_s13   ;;  %s1702_s9 = smov %s1496_s11 }
 0x18b   : > { %p9_p8 = scmp.ge.s32.totalorder %s12_s13, 12   ;;  %s1703_s10 = smov %s1500_s12 }
 0x18c   : > { %s1704_s11 = smov %s1707_s14  ;;  %s1705_s12 = smov %s1711_s15 }
 0x18d   :  { %11 = sbr.rel (!%p9_p8) target bundleno = 3 (0x3), region = 63 }

// kernel: l1_mrstft_loss.4
= control target key start
LH: loop header
LB: loop body
LE: loop exit
PB: predicated region body
PF: predicated region fallthrough
CT: control target
= control target key end

     0   :  { %s103_s0 = inlined_call_operand.vmem [shape: f32[8,512], index: 0, kind: input, shape index: {}]   ;;  %s104_s1 = inlined_call_operand.vmem [shape: f32[8,512], index: 1, kind: input, shape index: {}]   ;;  %s105_s2 = inlined_call_operand.vmem [shape: f32[8,512], index: 2, kind: output, shape index: {}]  }
   0x1   :  { %v23_v0 = vld [vmem:[%s103_s0] sm:$0xff]  ;;  %v24_v2 = vld [vmem:[%s103_s0 + $0x8] sm:$0xff]  ;;  %v25_v5 = vld [vmem:[%s103_s0 + $0x10] sm:$0xff] }
   0x2   :  { %v27_v1 = vld [vmem:[%s104_s1] sm:$0xff]  ;;  %v28_v4 = vld [vmem:[%s104_s1 + $0x8] sm:$0xff]  ;;  %v29_v6 = vld [vmem:[%s104_s1 + $0x10] sm:$0xff] }
   0x3   :  { %v31_v3 = vsub.f32 %v23_v0, %v27_v1  ;;  %v32_v7 = vsub.f32 %v24_v2, %v28_v4  ;;  %v33_v8 = vsub.f32 %v25_v5, %v29_v6  ;;  %v26_v9 = vld [vmem:[%s103_s0 + $0x18] sm:$0xff] }
   0x4   :  { %v30_v10 = vld [vmem:[%s104_s1 + $0x18] sm:$0xff] }
   0x5   :  { %v35_v11 = vand.u32 2147483647, %v31_v3  ;;  %v34_v12 = vsub.f32 %v26_v9, %v30_v10  ;;  %v36_v13 = vand.u32 2147483647, %v32_v7  ;;  %v37_v14 = vand.u32 2147483647, %v33_v8 }
   0x7   :  { %v38_v15 = vand.u32 2147483647, %v34_v12  ;;  %43 = vst [vmem:[%s105_s2] sm:$0xff] %v35_v11  ;;  %44 = vst [vmem:[%s105_s2 + $0x8] sm:$0xff] %v36_v13 }
   0x8   :  { %45 = vst [vmem:[%s105_s2 + $0x10] sm:$0xff] %v37_v14 }
   0x9   :  { %46 = vst [vmem:[%s105_s2 + $0x18] sm:$0xff] %v38_v15 }

// kernel: l1_mrstft_loss.7
= control target key start
LH: loop header
LB: loop body
LE: loop exit
PB: predicated region body
PF: predicated region fallthrough
CT: control target
= control target key end

     0   :  { %s1103_s9 = smov 0   ;;  %s1105_s10 = smov 0   ;;  %s1339_s0 = inlined_call_operand.vmem [shape: bf16[192,256], index: 0, kind: input, shape index: {}]   ;;  %s1340_s1 = inlined_call_operand.vmem [shape: bf16[3,256,256], index: 1, kind: input, shape index: {}]   ;;  %s1341_s2 = inlined_call_operand.vmem [shape: f32[2,8,384], index: 2, kind: output, shape index: {}]  }
   0x1   :  { %s1107_s11 = smov 0   ;;  %s1109_s12 = smov 0  }
   0x2   :  { %s1111_s13 = smov 0  }
   0x3 LB: > { %s21_s14 = sadd.s32 1, %s1077_s11  ;;  %s24_s15 = sadd.s32 1, %s1081_s12  ;;  %s1085_s13 = sphi %s1111_s13, %s12_s13   ;;  %s1081_s12 = sphi %s1109_s12, %s1345_s12   ;;  %s1077_s11 = sphi %s1107_s11, %s1344_s11   ;;  %s1073_s10 = sphi %s1105_s10, %s1343_s10   ;;  %s1069_s9 = sphi %s1103_s9, %s1342_s9  }
   0x4   : > { %p22_p0 = scmp.ge.s32.totalorder %s21_s14, 3  ;;  %p804_p1 = scmp.ge.s32.totalorder %s1085_s13, 1 }
   0x5   : > { %p126_p2 = scmp.lt.s32.totalorder %s1085_s13, 7 }
   0x6   : > { %s1347_s14 = smov (%p22_p0, %s21_s14), 0  ;;  %s1349_s15 = smov (!%p22_p0, %s24_s15), %s1081_s12 }
   0x7   : > { %p127_p3 = pnand %p804_p1, %p126_p2  ;;  %p26_p4 = scmp.ge.s32.totalorder %s1349_s15, 2 }
   0x8   : > { %s149_s16 = smul.u32 (!%p127_p3), 12, %s1073_s10  ;;  %p156_p5 = scmp.lt.s32.totalorder (!%p127_p3), %s1073_s10, 1 }
   0x9   : > { %s1351_s15 = smov (%p26_p4, %s1349_s15), 0  ;;  %130 = sbr.rel (%p127_p3) target bundleno = 382 (0x17e), region = 28 }
   0xa   : > { %p150_p6 = scmp.lt.s32.totalorder (!%p127_p3), %s149_s16, 23  ;;  %p808_p7 = scmp.ne.s32.totalorder (!%p127_p3), %s1069_s9, 0 }
  0x10   : > { %s1353_s10 = smov (!%p156_p5, %s1073_s10), 1  ;;  %s1355_s16 = smov (!%p150_p6, %s149_s16), 23 }
  0x11   : > { %s891_s17 = smul.u32 24, %s1353_s10  ;;  %s857_s18 = sshll.u32 %s1355_s16, 3  ;;  %v1087_v0 = vmov (!%p808_p7), 0.0  }
  0x12   : > { %s1138_s21 = scalar_lea.vmem %s1339_s0, %s857_s18  ;;  %164 = sbr.rel (%p808_p7) target bundleno = 25 (0x19), region = 32 }
  0x13   : > { %s1143_s24 = scalar_lea.vmem %s1341_s2, %s891_s17 }
  0x14   : > { %165 = vst [vmem:[%s1143_s24] sm:$0xff] (!%p808_p7), %v1087_v0  ;;  %166 = vst [vmem:[%s1143_s24 + $0x8] sm:$0xff] (!%p808_p7), %v1087_v0 }
  0x15   : > { %167 = vst [vmem:[%s1143_s24 + $0x10] sm:$0xff] (!%p808_p7), %v1087_v0 }
  0x19 PF: > { %s858_s25 = sshll.u32 %s1069_s9, 8  ;;  %v983_v1 = vld [vmem:[%s1138_s21 + $0x4] ss:$8 sps:$4 sm:$0xff]   ;;  %v986_v15 = vld [vmem:[%s1138_s21 + $0x34] ss:$8 sps:$4 sm:$0xff]  }
  0x1a   : > { %s1153_s28 = scalar_lea.vmem %s1340_s1, %s858_s25  ;;  %467 = vmatprep.mubr.bf16.mxu0 %v983_v1  ;;  %497 = vmatprep.mubr.bf16.mxu1 %v986_v15  ;;  %v981_v35 = vld [vmem:[%s1138_s21] ss:$8 sps:$4 sm:$0xff]   ;;  %v984_v36 = vld [vmem:[%s1138_s21 + $0x30] ss:$8 sps:$4 sm:$0xff]   ;;  %v987_v37 = vld [vmem:[%s1138_s21 + $0x14] ss:$8 sps:$4 sm:$0xff]  }
  0x1b   : > { %v933_v2 = vld [vmem:[%s1153_s28 + $0x4] ss:$8 sps:$4 sm:$0xff]   ;;  %v935_v3 = vld [vmem:[%s1153_s28] ss:$8 sps:$4 sm:$0xff]   ;;  %v936_v4 = vld [vmem:[%s1153_s28 + $0x14] ss:$8 sps:$4 sm:$0xff]  }
  0x1c   : > { %435 = vmatprep.subr.bf16.mxu0 %v933_v2  ;;  %859 = vmatprep.subr.bf16.mxu1 %v933_v2  ;;  %v938_v5 = vld [vmem:[%s1153_s28 + $0x10] ss:$8 sps:$4 sm:$0xff]   ;;  %v939_v6 = vld [vmem:[%s1153_s28 + $0x24] ss:$8 sps:$4 sm:$0xff]   ;;  %v941_v7 = vld [vmem:[%s1153_s28 + $0x20] ss:$8 sps:$4 sm:$0xff]  }
  0x1d   : > { %436 = vmatpush1.bf16.msra.mxu0 %v935_v3  ;;  %875 = vmatpush1.bf16.msra.mxu1 %v935_v3  ;;  %v942_v8 = vld [vmem:[%s1153_s28 + $0x34] ss:$8 sps:$4 sm:$0xff]   ;;  %v944_v9 = vld [vmem:[%s1153_s28 + $0x30] ss:$8 sps:$4 sm:$0xff]   ;;  %v945_v10 = vld [vmem:[%s1153_s28 + $0x44] ss:$8 sps:$4 sm:$0xff]  }
  0x1e   : > { %437 = vmatprep.subr.bf16.mxu0 %v936_v4  ;;  %860 = vmatprep.subr.bf16.mxu1 %v936_v4  ;;  %v947_v11 = vld [vmem:[%s1153_s28 + $0x40] ss:$8 sps:$4 sm:$0xff]   ;;  %v948_v12 = vld [vmem:[%s1153_s28 + $0x54] ss:$8 sps:$4 sm:$0xff]   ;;  %v950_v13 = vld [vmem:[%s1153_s28 + $0x50] ss:$8 sps:$4 sm:$0xff]  }
  0x1f   : > { %v951_v14 = vld [vmem:[%s1153_s28 + $0x64] ss:$8 sps:$4 sm:$0xff]   ;;  %v953_v16 = vld [vmem:[%s1153_s28 + $0x60] ss:$8 sps:$4 sm:$0xff]   ;;  %v954_v17 = vld [vmem:[%s1153_s28 + $0x74] ss:$8 sps:$4 sm:$0xff]  }
  0x20   : > { %v956_v18 = vld [vmem:[%s1153_s28 + $0x70] ss:$8 sps:$4 sm:$0xff]   ;;  %v957_v19 = vld [vmem:[%s1153_s28 + $0x84] ss:$8 sps:$4 sm:$0xff]   ;;  %v959_v20 = vld [vmem:[%s1153_s28 + $0x80] ss:$8 sps:$4 sm:$0xff]  }
  0x21   : > { %438 = vmatpush1.bf16.msra.mxu0 %v938_v5  ;;  %876 = vmatpush1.bf16.msra.mxu1 %v938_v5  ;;  %v960_v21 = vld [vmem:[%s1153_s28 + $0x94] ss:$8 sps:$4 sm:$0xff]   ;;  %v962_v22 = vld [vmem:[%s1153_s28 + $0x90] ss:$8 sps:$4 sm:$0xff]   ;;  %v963_v23 = vld [vmem:[%s1153_s28 + $0xa4] ss:$8 sps:$4 sm:$0xff]  }
  0x22   : > { %439 = vmatprep.subr.bf16.mxu0 %v939_v6  ;;  %861 = vmatprep.subr.bf16.mxu1 %v939_v6  ;;  %v965_v24 = vld [vmem:[%s1153_s28 + $0xa0] ss:$8 sps:$4 sm:$0xff]   ;;  %v966_v25 = vld [vmem:[%s1153_s28 + $0xb4] ss:$8 sps:$4 sm:$0xff]   ;;  %v968_v26 = vld [vmem:[%s1153_s28 + $0xb0] ss:$8 sps:$4 sm:$0xff]  }
  0x23   : > { %v969_v27 = vld [vmem:[%s1153_s28 + $0xc4] ss:$8 sps:$4 sm:$0xff]   ;;  %v971_v28 = vld [vmem:[%s1153_s28 + $0xc0] ss:$8 sps:$4 sm:$0xff]   ;;  %v972_v29 = vld [vmem:[%s1153_s28 + $0xd4] ss:$8 sps:$4 sm:$0xff]  }
  0x24   : > { %v974_v30 = vld [vmem:[%s1153_s28 + $0xd0] ss:$8 sps:$4 sm:$0xff]   ;;  %v975_v31 = vld [vmem:[%s1153_s28 + $0xe4] ss:$8 sps:$4 sm:$0xff]   ;;  %v977_v32 = vld [vmem:[%s1153_s28 + $0xe0] ss:$8 sps:$4 sm:$0xff]  }
  0x25   : > { %440 = vmatpush1.bf16.msra.mxu0 %v941_v7  ;;  %877 = vmatpush1.bf16.msra.mxu1 %v941_v7  ;;  %v978_v33 = vld [vmem:[%s1153_s28 + $0xf4] ss:$8 sps:$4 sm:$0xff]   ;;  %v980_v34 = vld [vmem:[%s1153_s28 + $0xf0] ss:$8 sps:$4 sm:$0xff]   ;;  %v989_v38 = vld [vmem:[%s1138_s21 + $0x44] ss:$8 sps:$4 sm:$0xff]  }
  0x26   : > { %441 = vmatprep.subr.bf16.mxu0 %v942_v8  ;;  %862 = vmatprep.subr.bf16.mxu1 %v942_v8  ;;  %v991_v39 = vld [vmem:[%s1138_s21 + $0x10] ss:$8 sps:$4 sm:$0xff]   ;;  %v992_v40 = vld [vmem:[%s1138_s21 + $0x40] ss:$8 sps:$4 sm:$0xff]   ;;  %v993_v41 = vld [vmem:[%s1138_s21 + $0x24] ss:$8 sps:$4 sm:$0xff]  }
  0x27   : > { %v995_v42 = vld [vmem:[%s1138_s21 + $0x54] ss:$8 sps:$4 sm:$0xff]   ;;  %v997_v43 = vld [vmem:[%s1138_s21 + $0x20] ss:$8 sps:$4 sm:$0xff]   ;;  %v998_v44 = vld [vmem:[%s1138_s21 + $0x50] ss:$8 sps:$4 sm:$0xff]  }
  0x29   : > { %442 = vmatpush1.bf16.msra.mxu0 %v944_v9  ;;  %878 = vmatpush1.bf16.msra.mxu1 %v944_v9 }
  0x2a   : > { %443 = vmatprep.subr.bf16.mxu0 %v945_v10  ;;  %863 = vmatprep.subr.bf16.mxu1 %v945_v10 }
  0x2d   : > { %444 = vmatpush1.bf16.msra.mxu0 %v947_v11  ;;  %879 = vmatpush1.bf16.msra.mxu1 %v947_v11 }
  0x2e   : > { %445 = vmatprep.subr.bf16.mxu0 %v948_v12  ;;  %864 = vmatprep.subr.bf16.mxu1 %v948_v12 }
  0x31   : > { %446 = vmatpush1.bf16.msra.mxu0 %v950_v13  ;;  %880 = vmatpush1.bf16.msra.mxu1 %v950_v13 }
  0x32   : > { %447 = vmatprep.subr.bf16.mxu0 %v951_v14  ;;  %865 = vmatprep.subr.bf16.mxu1 %v951_v14 }
  0x35   : > { %448 = vmatpush1.bf16.msra.mxu0 %v953_v16  ;;  %881 = vmatpush1.bf16.msra.mxu1 %v953_v16 }
  0x36   : > { %449 = vmatprep.subr.bf16.mxu0 %v954_v17  ;;  %866 = vmatprep.subr.bf16.mxu1 %v954_v17 }
  0x39   : > { %450 = vmatpush1.bf16.msra.mxu0 %v956_v18  ;;  %882 = vmatpush1.bf16.msra.mxu1 %v956_v18 }
  0x3a   : > { %451 = vmatprep.subr.bf16.mxu0 %v957_v19  ;;  %867 = vmatprep.subr.bf16.mxu1 %v957_v19 }
  0x3d   : > { %452 = vmatpush1.bf16.msra.mxu0 %v959_v20  ;;  %883 = vmatpush1.bf16.msra.mxu1 %v959_v20 }
  0x3e   : > { %453 = vmatprep.subr.bf16.mxu0 %v960_v21  ;;  %868 = vmatprep.subr.bf16.mxu1 %v960_v21 }
  0x41   : > { %454 = vmatpush1.bf16.msra.mxu0 %v962_v22  ;;  %884 = vmatpush1.bf16.msra.mxu1 %v962_v22 }
  0x42   : > { %455 = vmatprep.subr.bf16.mxu0 %v963_v23  ;;  %869 = vmatprep.subr.bf16.mxu1 %v963_v23 }
  0x45   : > { %456 = vmatpush1.bf16.msra.mxu0 %v965_v24  ;;  %885 = vmatpush1.bf16.msra.mxu1 %v965_v24 }
  0x46   : > { %457 = vmatprep.subr.bf16.mxu0 %v966_v25  ;;  %870 = vmatprep.subr.bf16.mxu1 %v966_v25 }
  0x49   : > { %458 = vmatpush1.bf16.msra.mxu0 %v968_v26  ;;  %886 = vmatpush1.bf16.msra.mxu1 %v968_v26 }
  0x4a   : > { %459 = vmatprep.subr.bf16.mxu0 %v969_v27  ;;  %871 = vmatprep.subr.bf16.mxu1 %v969_v27 }
  0x4d   : > { %460 = vmatpush1.bf16.msra.mxu0 %v971_v28  ;;  %887 = vmatpush1.bf16.msra.mxu1 %v971_v28 }
  0x4e   : > { %461 = vmatprep.subr.bf16.mxu0 %v972_v29  ;;  %872 = vmatprep.subr.bf16.mxu1 %v972_v29 }
  0x51   : > { %462 = vmatpush1.bf16.msra.mxu0 %v974_v30  ;;  %888 = vmatpush1.bf16.msra.mxu1 %v974_v30 }
  0x52   : > { %463 = vmatprep.subr.bf16.mxu0 %v975_v31  ;;  %873 = vmatprep.subr.bf16.mxu1 %v975_v31 }
  0x55   : > { %464 = vmatpush1.bf16.msra.mxu0 %v977_v32  ;;  %889 = vmatpush1.bf16.msra.mxu1 %v977_v32 }
  0x56   : > { %465 = vmatprep.subr.bf16.mxu0 %v978_v33  ;;  %874 = vmatprep.subr.bf16.mxu1 %v978_v33 }
  0x59   : > { %466 = vmatpush1.bf16.msra.mxu0 %v980_v34  ;;  %890 = vmatpush1.bf16.msra.mxu1 %v980_v34 }
  0x5c   : > { %468 = vmatmul.mubr.bf16.vlgmr.msra.gmra.mrb[0].mxu0 %v981_v35  ;;  %498 = vmatmul.mubr.bf16.vlgmr.msra.gmra.mrb[0].mxu1 %v984_v36 }
  0x5d   : > { %477 = vmatprep.mubr.bf16.mxu0 %v987_v37  ;;  %507 = vmatprep.mubr.bf16.mxu1 %v989_v38 }
  0x64   : > { %478 = vmatmul.mubr.bf16.gmra.mrb[4].mxu0 %v991_v39  ;;  %508 = vmatmul.mubr.bf16.gmra.mrb[4].mxu1 %v992_v40 }
  0x65   : > { %487 = vmatprep.mubr.bf16.mxu0 %v993_v41  ;;  %517 = vmatprep.mubr.bf16.mxu1 %v995_v42 }
  0x6c   : > { %488 = vmatmul.mubr.bf16.gmra.mrb[8].mxu0 %v997_v43  ;;  %518 = vmatmul.mubr.bf16.gmra.mrb[8].mxu1 %v998_v44 }
 0x12f   : > { %v469_v45 = vpop.f32.mrb[0].mxu0  ;;  %v499_v46 = vpop.f32.mrb[0].mxu1 }
 0x130   : > { %v528_v47 = vmul.f32 %v469_v45, %v469_v45  ;;  %v552_v48 = vmul.f32 %v499_v46, %v499_v46  ;;  %v471_v49 = vpop.f32.mrb[1].mxu0  ;;  %v501_v50 = vpop.f32.mrb[1].mxu1 }
 0x131   : > { %v534_v51 = vmul.f32 %v471_v49, %v471_v49  ;;  %v558_v52 = vmul.f32 %v501_v50, %v501_v50  ;;  %v473_v53 = vpop.f32.mrb[2].mxu0  ;;  %v503_v54 = vpop.f32.mrb[2].mxu1 }
 0x132   : > { %v529_v55 = vmul.f32 %v473_v53, %v473_v53  ;;  %v553_v56 = vmul.f32 %v503_v54, %v503_v54  ;;  %v475_v57 = vpop.f32.mrb[3].mxu0  ;;  %v505_v58 = vpop.f32.mrb[3].mxu1 }
 0x133   : > { %v540_v59 = vadd.f32 %v534_v51, %v528_v47  ;;  %v564_v60 = vadd.f32 %v558_v52, %v552_v48  ;;  %v535_v61 = vmul.f32 %v475_v57, %v475_v57  ;;  %v559_v62 = vmul.f32 %v505_v58, %v505_v58 }
 0x135   : > { %v1199_v63 = vmax.f32 %v540_v59, 1e-07  ;;  %v1201_v0 = vmax.f32 %v564_v60, 1e-07  ;;  %v541_v1 = vadd.f32 %v535_v61, %v529_v55  ;;  %v565_v2 = vadd.f32 %v559_v62, %v553_v56 }
 0x137   : > { %999 = vrsqrt.f32 %v1199_v63  ;;  %v479_v3 = vpop.f32.mrb[4].mxu0  ;;  %v509_v4 = vpop.f32.mrb[4].mxu1  ;;  %v1205_v7 = vmax.f32 %v541_v1, 1e-07  ;;  %v1207_v8 = vmax.f32 %v565_v2, 1e-07 }
 0x138   : > { %1001 = vrsqrt.f32 %v1201_v0  ;;  %v481_v5 = vpop.f32.mrb[5].mxu0  ;;  %v511_v6 = vpop.f32.mrb[5].mxu1  ;;  %v530_v9 = vmul.f32 %v479_v3, %v479_v3  ;;  %v554_v10 = vmul.f32 %v509_v4, %v509_v4  ;;  %vm578_vm0 = vcmp.eq.f32.partialorder %v1199_v63, inf }
 0x139   : > { %v483_v11 = vpop.f32.mrb[6].mxu0  ;;  %v513_v12 = vpop.f32.mrb[6].mxu1  ;;  %v536_v13 = vmul.f32 %v481_v5, %v481_v5  ;;  %v560_v14 = vmul.f32 %v511_v6, %v511_v6  ;;  %1003 = vrsqrt.f32 %v1205_v7  ;;  %v716_v19 = vadd.f32 %v1207_v8, %v1201_v0 }
 0x13a   : > { %v485_v15 = vpop.f32.mrb[7].mxu0  ;;  %v515_v16 = vpop.f32.mrb[7].mxu1  ;;  %v531_v17 = vmul.f32 %v483_v11, %v483_v11  ;;  %1005 = vrsqrt.f32 %v1207_v8  ;;  %v555_v18 = vmul.f32 %v513_v12, %v513_v12  ;;  %vm580_vm1 = vcmp.eq.f32.partialorder %v1199_v63, 0.0 }
 0x13b   : > { %v542_v20 = vadd.f32 %v536_v13, %v530_v9  ;;  %v566_v21 = vadd.f32 %v560_v14, %v554_v10  ;;  %v537_v22 = vmul.f32 %v485_v15, %v485_v15  ;;  %v581_v23 = vand.u32 2147483648, %v1199_v63 }
 0x13c   : > { %v561_v24 = vmul.f32 %v515_v16, %v515_v16  ;;  %vm620_vm2 = vcmp.eq.f32.partialorder %v1201_v0, inf  ;;  %vm622_vm3 = vcmp.eq.f32.partialorder %v1201_v0, 0.0  ;;  %v623_v30 = vand.u32 2147483648, %v1201_v0 }
 0x13d   : > { %v1216_v25 = vmax.f32 %v542_v20, 1e-07  ;;  %v1218_v26 = vmax.f32 %v566_v21, 1e-07  ;;  %v543_v27 = vadd.f32 %v537_v22, %v531_v17  ;;  %vm585_vm4 = vcmp.eq.f32.partialorder %v1205_v7, inf }
 0x13e   : > { %v567_v31 = vadd.f32 %v561_v24, %v555_v18  ;;  %vm587_vm5 = vcmp.eq.f32.partialorder %v1205_v7, 0.0  ;;  %v588_v35 = vand.u32 2147483648, %v1205_v7  ;;  %vm627_vm6 = vcmp.eq.f32.partialorder %v1207_v8, inf }
 0x13f   : > { %v489_v28 = vpop.f32.mrb[8].mxu0  ;;  %v519_v29 = vpop.f32.mrb[8].mxu1  ;;  %1007 = vrsqrt.f32 %v1216_v25  ;;  %vm629_vm7 = vcmp.eq.f32.partialorder %v1207_v8, 0.0  ;;  %v630_v43 = vand.u32 2147483648, %v1207_v8  ;;  %v717_v44 = vadd.f32 %v716_v19, %v1218_v26 }
 0x140   : > { %v491_v32 = vpop.f32.mrb[9].mxu0  ;;  %v521_v33 = vpop.f32.mrb[9].mxu1  ;;  %1009 = vrsqrt.f32 %v1218_v26  ;;  %v1236_v45 = vmax.f32 %v543_v27, 1e-07  ;;  %v1241_v47 = vmax.f32 %v567_v31, 1e-07  ;;  %v532_v48 = vmul.f32 %v489_v28, %v489_v28 }
 0x141   : > { %v1000_v34 = vpop.eup %999  ;;  %v493_v36 = vpop.f32.mrb[10].mxu0  ;;  %v556_v49 = vmul.f32 %v519_v29, %v519_v29  ;;  %vm592_vm8 = vcmp.eq.f32.partialorder %v1216_v25, inf  ;;  %vm594_vm9 = vcmp.eq.f32.partialorder %v1216_v25, 0.0  ;;  %v538_v56 = vmul.f32 %v491_v32, %v491_v32 }
 0x142   : > { %v523_v37 = vpop.f32.mrb[10].mxu1  ;;  %v1002_v38 = vpop.eup %1001  ;;  %v577_v39 = vmul.f32 %v1000_v34, %v1199_v63  ;;  %1011 = vrsqrt.f32 %v1236_v45  ;;  %v562_v59 = vmul.f32 %v521_v33, %v521_v33  ;;  %v595_v61 = vand.u32 2147483648, %v1216_v25 }
 0x143   : > { %v495_v40 = vpop.f32.mrb[11].mxu0  ;;  %v1231_v41 = vpop.f32.mrb[11].mxu1  ;;  %v619_v42 = vmul.f32 %v1002_v38, %v1201_v0  ;;  %vm634_vm10 = vcmp.eq.f32.partialorder %v1218_v26, inf  ;;  %vm636_vm11 = vcmp.eq.f32.partialorder %v1218_v26, 0.0  ;;  %v718_v2 = vadd.f32 %v717_v44, %v1241_v47 }
 0x144   : > { %v579_v46 = vsel %vm578_vm0, %v1199_v63, %v577_v39  ;;  %v1004_v50 = vpop.eup %1003  ;;  %v544_v3 = vadd.f32 %v538_v56, %v532_v48  ;;  %vm599_vm12 = vcmp.eq.f32.partialorder %v1236_v45, inf  ;;  %v568_v6 = vadd.f32 %v562_v59, %v556_v49  ;;  %v709_v56 = vld [vmem:[%s1143_s24 + $0x8] sm:$0xff] }
 0x145   : > { %v582_v51 = vsel %vm580_vm1, %v581_v23, %v579_v46  ;;  %v621_v52 = vsel %vm620_vm2, %v1201_v0, %v619_v42  ;;  %v1006_v53 = vpop.eup %1005  ;;  %v584_v55 = vmul.f32 %v1004_v50, %v1205_v7  ;;  %v637_v0 = vand.u32 2147483648, %v1218_v26 }
 0x146   : > { %1013 = vlog2.f32 %v582_v51  ;;  %v624_v54 = vsel %vm622_vm3, %v623_v30, %v621_v52  ;;  %v626_v58 = vmul.f32 %v1006_v53, %v1207_v8  ;;  %vm601_vm13 = vcmp.eq.f32.partialorder %v1236_v45, 0.0 }
 0x147   : > { %v660_v57 = vsub.f32 %v624_v54, %v582_v51  ;;  %1015 = vlog2.f32 %v624_v54  ;;  %v586_v60 = vsel %vm585_vm4, %v1205_v7, %v584_v55  ;;  %v602_v10 = vand.u32 2147483648, %v1236_v45 }
 0x148   : > { %1017 = vrsqrt.f32 %v1241_v47  ;;  %v589_v62 = vsel %vm587_vm5, %v588_v35, %v586_v60  ;;  %v628_v63 = vsel %vm627_vm6, %v1207_v8, %v626_v58  ;;  %v1275_v11 = vmax.f32 %v544_v3, 1e-07 }
 0x149   : > { %1019 = vlog2.f32 %v589_v62  ;;  %v631_v1 = vsel %vm629_vm7, %v630_v43, %v628_v63  ;;  %v1008_v4 = vpop.eup %1007  ;;  %v666_v8 = vmul.f32 %v660_v57, %v660_v57  ;;  %v533_v14 = vmul.f32 %v493_v36, %v493_v36 }
 0x14a   : > { %v661_v5 = vsub.f32 %v631_v1, %v589_v62  ;;  %1021 = vlog2.f32 %v631_v1  ;;  %v1010_v7 = vpop.eup %1009  ;;  %v591_v9 = vmul.f32 %v1008_v4, %v1216_v25  ;;  %v1282_v16 = vmax.f32 %v568_v6, 1e-07 }
 0x14b   : > { %v633_v13 = vmul.f32 %v1010_v7, %v1218_v26  ;;  %1023 = vrsqrt.f32 %v1275_v11  ;;  %v557_v17 = vmul.f32 %v523_v37, %v523_v37  ;;  %v539_v22 = vmul.f32 %v495_v40, %v495_v40 }
 0x14c   : > { %v667_v12 = vmul.f32 %v661_v5, %v661_v5  ;;  %v593_v15 = vsel %vm592_vm8, %v1216_v25, %v591_v9  ;;  %v1012_v18 = vpop.eup %1011  ;;  %v563_v28 = vmul.f32 %v1231_v41, %v1231_v41  ;;  %vm641_vm14 = vcmp.eq.f32.partialorder %v1241_v47, inf }
 0x14d   : > { %v596_v20 = vsel %vm594_vm9, %v595_v61, %v593_v15  ;;  %v635_v21 = vsel %vm634_vm10, %v1218_v26, %v633_v13  ;;  %v598_v27 = vmul.f32 %v1012_v18, %v1236_v45  ;;  %v644_v26 = vand.u32 2147483648, %v1241_v47 }
 0x14e   : > { %v711_v19 = vadd.f32 %v667_v12, %v666_v8  ;;  %1025 = vlog2.f32 %v596_v20  ;;  %v638_v24 = vsel %vm636_vm11, %v637_v0, %v635_v21  ;;  %v719_v37 = vadd.f32 %v718_v2, %v1282_v16 }
 0x14f   : > { %v662_v31 = vsub.f32 %v638_v24, %v596_v20  ;;  %1027 = vlog2.f32 %v638_v24  ;;  %v600_v33 = vsel %vm599_vm12, %v1236_v45, %v598_v27  ;;  %v545_v40 = vadd.f32 %v539_v22, %v533_v14 }
 0x150   : > { %v1014_v23 = vpop.eup %1013  ;;  %1029 = vrsqrt.f32 %v1282_v16  ;;  %v603_v35 = vsel %vm601_vm13, %v602_v10, %v600_v33  ;;  %v569_v41 = vadd.f32 %v563_v28, %v557_v17  ;;  %vm643_vm15 = vcmp.eq.f32.partialorder %v1241_v47, 0.0 }
 0x151   : > { %v1016_v29 = vpop.eup %1015  ;;  %v685_v30 = vmul.f32 0.6931472, %v1014_v23  ;;  %v668_v34 = vmul.f32 %v662_v31, %v662_v31  ;;  %1031 = vlog2.f32 %v603_v35  ;;  %v551_v49 = vmax.f32 %v545_v40, 1e-07 }
 0x152   : > { %v1018_v25 = vpop.eup %1017  ;;  %v673_v32 = vmul.f32 0.6931472, %v1016_v29  ;;  %v575_v51 = vmax.f32 %v569_v41, 1e-07  ;;  %vm606_vm0 = vcmp.eq.f32.partialorder %v1275_v11, inf  ;;  %vm608_vm1 = vcmp.eq.f32.partialorder %v1275_v11, 0.0 }
 0x153   : > { %v640_v36 = vmul.f32 %v1018_v25, %v1241_v47  ;;  %v1020_v38 = vpop.eup %1019  ;;  %v712_v44 = vadd.f32 %v711_v19, %v668_v34  ;;  %vm648_vm2 = vcmp.eq.f32.partialorder %v1282_v16, inf  ;;  %v651_v10 = vand.u32 2147483648, %v1282_v16 }
 0x154   : > { %v696_v39 = vsub.f32 %v673_v32, %v685_v30  ;;  %v1022_v42 = vpop.eup %1021  ;;  %v687_v43 = vmul.f32 0.6931472, %v1020_v38  ;;  %v720_v0 = vadd.f32 %v719_v37, %v575_v51  ;;  %vm650_vm3 = vcmp.eq.f32.partialorder %v1282_v16, 0.0  ;;  %v708_v38 = vld [vmem:[%s1143_s24] sm:$0xff] }
 0x155   : > { %v642_v46 = vsel %vm641_vm14, %v1241_v47, %v640_v36  ;;  %v675_v45 = vmul.f32 0.6931472, %v1022_v42  ;;  %v1024_v52 = vpop.eup %1023  ;;  %v609_v47 = vand.u32 2147483648, %v1275_v11  ;;  %vm613_vm4 = vcmp.eq.f32.partialorder %v551_v49, inf }
 0x156   : > { %v645_v48 = vsel %vm643_vm15, %v644_v26, %v642_v46  ;;  %v605_v55 = vmul.f32 %v1024_v52, %v1275_v11  ;;  %v702_v58 = vand.u32 2147483647, %v696_v39  ;;  %v727_v6 = vadd.f32 %v720_v0, %v709_v56  ;;  %v710_v52 = vld [vmem:[%s1143_s24 + $0x10] sm:$0xff] }
 0x157   : > { %v663_v50 = vsub.f32 %v645_v48, %v603_v35  ;;  %1033 = vlog2.f32 %v645_v48  ;;  %v697_v53 = vsub.f32 %v675_v45, %v687_v43  ;;  %vm615_vm5 = vcmp.eq.f32.partialorder %v551_v49, 0.0 }
 0x158   : > { %1035 = vrsqrt.f32 %v551_v49  ;;  %v1026_v57 = vpop.eup %1025  ;;  %v607_v63 = vsel %vm606_vm0, %v1275_v11, %v605_v55  ;;  %730 = vst [vmem:[%s1143_s24 + $0x8] sm:$0xff] %v727_v6  ;;  %v616_v24 = vand.u32 2147483648, %v551_v49  ;;  %vm655_vm6 = vcmp.eq.f32.partialorder %v575_v51, inf }
 0x159   : > { %v669_v54 = vmul.f32 %v663_v50, %v663_v50  ;;  %1037 = vrsqrt.f32 %v575_v51  ;;  %v703_v59 = vand.u32 2147483647, %v697_v53  ;;  %v1028_v60 = vpop.eup %1027  ;;  %v689_v61 = vmul.f32 0.6931472, %v1026_v57 }
 0x15a   : > { %v1030_v1 = vpop.eup %1029  ;;  %v677_v3 = vmul.f32 0.6931472, %v1028_v60  ;;  %v610_v4 = vsel %vm608_vm1, %v609_v47, %v607_v63  ;;  %v658_v29 = vand.u32 2147483648, %v575_v51  ;;  %vm657_vm7 = vcmp.eq.f32.partialorder %v575_v51, 0.0 }
 0x15b   : > { %v713_v62 = vadd.f32 %v712_v44, %v669_v54  ;;  %v721_v2 = vadd.f32 %v703_v59, %v702_v58  ;;  %1039 = vlog2.f32 %v610_v4  ;;  %v647_v5 = vmul.f32 %v1030_v1, %v1282_v16  ;;  %v1032_v7 = vpop.eup %1031 }
 0x15c   : > { %v698_v9 = vsub.f32 %v677_v3, %v689_v61  ;;  %v691_v12 = vmul.f32 0.6931472, %v1032_v7 }
 0x15d   : > { %v649_v8 = vsel %vm648_vm2, %v1282_v16, %v647_v5 }
 0x15e   : > { %v704_v11 = vand.u32 2147483647, %v698_v9  ;;  %v652_v13 = vsel %vm650_vm3, %v651_v10, %v649_v8 }
 0x15f   : > { %v664_v15 = vsub.f32 %v652_v13, %v610_v4  ;;  %1041 = vlog2.f32 %v652_v13 }
 0x160   : > { %v722_v18 = vadd.f32 %v721_v2, %v704_v11 }
 0x161   : > { %v1034_v14 = vpop.eup %1033  ;;  %v670_v21 = vmul.f32 %v664_v15, %v664_v15 }
 0x162   : > { %v1036_v17 = vpop.eup %1035  ;;  %v679_v19 = vmul.f32 0.6931472, %v1034_v14 }
 0x163   : > { %v1038_v20 = vpop.eup %1037  ;;  %v612_v22 = vmul.f32 %v1036_v17, %v551_v49  ;;  %v714_v28 = vadd.f32 %v713_v62, %v670_v21 }
 0x164   : > { %v699_v23 = vsub.f32 %v679_v19, %v691_v12  ;;  %v654_v27 = vmul.f32 %v1038_v20, %v575_v51 }
 0x165   : > { %v614_v16 = vsel %vm613_vm4, %v551_v49, %v612_v22  ;;  %v1040_v32 = vpop.eup %1039 }
 0x166   : > { %v705_v30 = vand.u32 2147483647, %v699_v23  ;;  %v617_v31 = vsel %vm615_vm5, %v616_v24, %v614_v16  ;;  %v656_v25 = vsel %vm655_vm6, %v575_v51, %v654_v27  ;;  %v693_v35 = vmul.f32 0.6931472, %v1040_v32 }
 0x167   : > { %1043 = vlog2.f32 %v617_v31  ;;  %v659_v33 = vsel %vm657_vm7, %v658_v29, %v656_v25 }
 0x168   : > { %v723_v26 = vadd.f32 %v722_v18, %v705_v30  ;;  %v665_v34 = vsub.f32 %v659_v33, %v617_v31  ;;  %1045 = vlog2.f32 %v659_v33 }
 0x169   : > { %v1042_v37 = vpop.eup %1041 }
 0x16a   : > { %v671_v36 = vmul.f32 %v665_v34, %v665_v34  ;;  %v681_v39 = vmul.f32 0.6931472, %v1042_v37 }
 0x16c   : > { %v715_v40 = vadd.f32 %v714_v28, %v671_v36  ;;  %v700_v41 = vsub.f32 %v681_v39, %v693_v35 }
 0x16e   : > { %v726_v42 = vadd.f32 %v715_v40, %v708_v38  ;;  %v706_v43 = vand.u32 2147483647, %v700_v41 }
 0x170   : > { %729 = vst [vmem:[%s1143_s24] sm:$0xff] %v726_v42  ;;  %v724_v45 = vadd.f32 %v723_v26, %v706_v43 }
 0x171   : > { %v1044_v44 = vpop.eup %1043 }
 0x172   : > { %v1046_v46 = vpop.eup %1045  ;;  %v695_v48 = vmul.f32 0.6931472, %v1044_v44 }
 0x173   : > { %v683_v49 = vmul.f32 0.6931472, %v1046_v46 }
 0x175   : > { %v701_v50 = vsub.f32 %v683_v49, %v695_v48 }
 0x177   : > { %v707_v51 = vand.u32 2147483647, %v701_v50 }
 0x179   : > { %v725_v53 = vadd.f32 %v724_v45, %v707_v51 }
 0x17b   : > { %v728_v54 = vadd.f32 %v725_v53, %v710_v52 }
 0x17d   : > { %731 = vst [vmem:[%s1143_s24 + $0x10] sm:$0xff] %v728_v54 }
 0x17e PF: > { %s12_s13 = sadd.s32 1, %s1085_s13   ;;  %s1342_s9 = smov %s1077_s11 }
 0x17f   : > { %p9_p8 = scmp.ge.s32.totalorder %s12_s13, 8   ;;  %s1343_s10 = smov %s1081_s12 }
 0x180   : > { %s1344_s11 = smov %s1347_s14  ;;  %s1345_s12 = smov %s1351_s15 }
 0x181   :  { %11 = sbr.rel (!%p9_p8) target bundleno = 3 (0x3), region = 63 }

</bundles_post_ra>
